<compile_context>
chip_gen: v5e
topology: v5e:2x2
jax: 0.10.0
libtpu: 0.0.40
codegen_flags: <defaults>
</compile_context>

<pallas_src>
import functools

import jax
import jax.numpy as jnp
from jax import lax
from jax.experimental import pallas as pl


# ----------------------------- in-kernel helper -------------------------------

def _layernorm(x, scale, shift, eps=1e-5):
    mean = jnp.mean(x, axis=-1, keepdims=True)
    var = jnp.mean((x - mean) ** 2, axis=-1, keepdims=True)   # unbiased=False
    return scale * ((x - mean) * lax.rsqrt(var + eps)) + shift


# --------------------------- fully fused GPT1 kernel --------------------------

def gpt1_kernel(x_ref, sin_ref, cos_ref,
                ln1s_ref, ln1b_ref, wqkv_ref, bqkv_ref, wo_ref, bo_ref,
                ln2s_ref, ln2b_ref, w1_ref, b1_ref, w2_ref, b2_ref,
                fns_ref, fnb_ref, wout_ref,
                o_ref, *, B, N, H, L):
    M, D = x_ref.shape
    Hd = D // H
    half = D // 2
    scale = 1.0 / (Hd ** 0.5)

    x = x_ref[...].astype(jnp.float32)          # residual stream, lives in vregs
    sin = sin_ref[...]                          # (M, D/2)
    cos = cos_ref[...]

    # Causal mask built ONCE for all layers (JAX does not CSE iotas).
    row = lax.broadcasted_iota(jnp.int32, (N, N), 0)
    col = lax.broadcasted_iota(jnp.int32, (N, N), 1)
    keep = (col <= row)[None, :, :]             # (1, N, N)
    neg_big = jnp.float32(-1e30)                # finite: no NaN risk

    def to_heads(t):
        # (M, D) -> (H*B, N, Hd): per-head tiles stacked along the batch axis.
        return jnp.concatenate(
            [t[:, h * Hd:(h + 1) * Hd].reshape(B, N, Hd) for h in range(H)],
            axis=0)

    for l in range(L):                          # L=2, statically unrolled
        # ---- LN1 + fused QKV projection (Q/K columns pre-permuted even|odd) ----
        h1 = _layernorm(x, ln1s_ref[l], ln1b_ref[l])
        qkv = (jnp.dot(h1, wqkv_ref[l], preferred_element_type=jnp.float32)
               + bqkv_ref[l])                   # (M, 3D)

        # ---- rotary (reference's nonstandard form): pure VPU math + concat ----
        qe, qo = qkv[:, 0:half], qkv[:, half:D]
        ke, ko = qkv[:, D:D + half], qkv[:, D + half:2 * D]
        v = qkv[:, 2 * D:3 * D]
        q_rot = jnp.concatenate([qe * cos - qo * sin, qe * sin - qo * cos], axis=-1)
        k_rot = jnp.concatenate([ke * cos - ko * sin, ke * sin - ko * cos], axis=-1)

        # ---- batched causal attention over all (batch, head) pairs at once ----
        qh = to_heads(q_rot) * scale            # (H*B, N, Hd)
        kh = to_heads(k_rot)
        vh = to_heads(v)
        sc = jnp.einsum('bqd,bkd->bqk', qh, kh,
                        preferred_element_type=jnp.float32)       # (H*B, N, N)
        sc = jnp.where(keep, sc, neg_big)
        m = jnp.max(sc, axis=-1, keepdims=True)
        e = jnp.exp(sc - m)
        p = e / jnp.sum(e, axis=-1, keepdims=True)                # exact softmax
        ctx_hb = jnp.einsum('bqk,bkd->bqd', p, vh,
                            preferred_element_type=jnp.float32)   # (H*B, N, Hd)
        ctx = jnp.concatenate(
            [ctx_hb[h * B:(h + 1) * B].reshape(M, Hd) for h in range(H)],
            axis=-1)                                              # (M, D)

        # ---- output projection + residual (dropout p=0 == identity) ----
        attn = (jnp.dot(ctx, wo_ref[l], preferred_element_type=jnp.float32)
                + bo_ref[l])
        x = x + attn

        # ---- LN2 + FFN (SiLU) + residual ----
        h2 = _layernorm(x, ln2s_ref[l], ln2b_ref[l])
        f = jnp.dot(h2, w1_ref[l], preferred_element_type=jnp.float32) + b1_ref[l]
        f = f * jax.nn.sigmoid(f)                                 # SiLU
        f = jnp.dot(f, w2_ref[l], preferred_element_type=jnp.float32) + b2_ref[l]
        x = x + f

    # ---- final LayerNorm + vocab projection (lane-dense 256-wide store) ----
    hf = _layernorm(x, fns_ref[...], fnb_ref[...])
    o_ref[...] = jnp.dot(hf, wout_ref[...],
                         preferred_element_type=jnp.float32).astype(o_ref.dtype)


# ----------------------------- JAX glue / wrapper ------------------------------

def gpt1_forward(ids, params, cfg):
    B, N = ids.shape
    D = cfg['emb_dim']
    H = cfg['n_heads']
    V = cfg['vocab_size']
    L = cfg['n_layers']
    M = B * N
    half = D // 2

    # TODO(synk): embedding gathers stay as JAX glue (no clean tiled-gather win
    # at this size); dropout(p=0) is an identity.
    tok = params['tok_emb'][ids]                             # (B, N, D)
    pos = params['pos_emb'][jnp.arange(N)]                   # (N, D)
    x0 = (tok + pos).reshape(M, D).astype(jnp.float32)

    # Rotary sin/cos tables (reference formulation over the FULL model dim).
    freq_cis = jnp.power(10000.0, -2.0 * jnp.arange(half, dtype=jnp.float32) / D)
    freq = jnp.arange(N, dtype=jnp.float32)[:, None] * freq_cis[None, :]
    sin = jnp.tile(jnp.sin(freq), (B, 1))                    # (M, D/2)
    cos = jnp.tile(jnp.cos(freq), (B, 1))

    # Offline column permutation of the Q and K blocks of the fused QKV weight:
    # even-indexed output dims first, odd second -> in-kernel rotary needs no
    # gather/scatter at all.
    perm = jnp.concatenate([jnp.arange(0, D, 2), jnp.arange(1, D, 2)])

    def permute_qkv(w):                                      # (D, 3D)
        wq, wk, wv = w[:, :D], w[:, D:2 * D], w[:, 2 * D:]
        return jnp.concatenate([wq[:, perm], wk[:, perm], wv], axis=-1)

    def permute_bias(b):                                     # (3D,)
        bq, bk, bv = b[:D], b[D:2 * D], b[2 * D:]
        return jnp.concatenate([bq[perm], bk[perm], bv])

    blocks = params['blocks']
    stack = lambda name: jnp.stack([blk[name] for blk in blocks])
    ln1s = stack('ln1_scale').reshape(L, 1, D)
    ln1b = stack('ln1_shift').reshape(L, 1, D)
    wqkv = jnp.stack([permute_qkv(blk['wqkv']) for blk in blocks])            # (L, D, 3D)
    bqkv = jnp.stack([permute_bias(blk['bqkv']) for blk in blocks]).reshape(L, 1, 3 * D)
    wo = stack('wo')                                                          # (L, D, D)
    bo = stack('bo').reshape(L, 1, D)
    ln2s = stack('ln2_scale').reshape(L, 1, D)
    ln2b = stack('ln2_shift').reshape(L, 1, D)
    w1 = stack('w1')                                                          # (L, D, 4D)
    b1 = stack('b1').reshape(L, 1, 4 * D)
    w2 = stack('w2')                                                          # (L, 4D, D)
    b2 = stack('b2').reshape(L, 1, D)

    kern = functools.partial(gpt1_kernel, B=B, N=N, H=H, L=L)
    # Gridless: whole working set (<1 MiB) fits VMEM on v5e/v6e/v7x; a grid
    # would be pure per-step overhead at this size.
    logits = pl.pallas_call(
        kern,
        out_shape=jax.ShapeDtypeStruct((M, V), jnp.float32),
    )(x0, sin, cos,
      ln1s, ln1b, wqkv, bqkv, wo, bo, ln2s, ln2b, w1, b1, w2, b2,
      params['fn_scale'].reshape(1, D), params['fn_shift'].reshape(1, D),
      params['w_out'])
    return logits.reshape(B, N, V)


# ----------------------------- pure-JAX reference ------------------------------

def gpt1_reference(ids, params, cfg):
    B, N = ids.shape
    D = cfg['emb_dim']
    H = cfg['n_heads']
    Hd = D // H
    half = D // 2

    x = params['tok_emb'][ids] + params['pos_emb'][jnp.arange(N)]

    freq_cis = jnp.power(10000.0, -2.0 * jnp.arange(half, dtype=jnp.float32) / D)
    freq = jnp.arange(N, dtype=jnp.float32)[:, None] * freq_cis[None, :]
    sin = jnp.sin(freq)[None]
    cos = jnp.cos(freq)[None]

    def ln(t, s, b):
        mu = t.mean(-1, keepdims=True)
        va = ((t - mu) ** 2).mean(-1, keepdims=True)
        return s * (t - mu) / jnp.sqrt(va + 1e-5) + b

    mask = jnp.triu(jnp.ones((N, N), bool), 1)
    for blk in params['blocks']:
        h = ln(x, blk['ln1_scale'], blk['ln1_shift'])
        qkv = h @ blk['wqkv'] + blk['bqkv']
        q, k, v = qkv[..., :D], qkv[..., D:2 * D], qkv[..., 2 * D:]
        qe, qo = q[..., ::2], q[..., 1::2]
        ke, ko = k[..., ::2], k[..., 1::2]
        q = jnp.concatenate([qe * cos - qo * sin, qe * sin - qo * cos], -1)
        k = jnp.concatenate([ke * cos - ko * sin, ke * sin - ko * cos], -1)
        q = q.reshape(B, N, H, Hd).transpose(0, 2, 1, 3)
        k = k.reshape(B, N, H, Hd).transpose(0, 2, 1, 3)
        v = v.reshape(B, N, H, Hd).transpose(0, 2, 1, 3)
        sc = q @ jnp.swapaxes(k, -1, -2)
        sc = jnp.where(mask, -jnp.inf, sc)
        w = jax.nn.softmax(sc / Hd ** 0.5, axis=-1)
        ctx = (w @ v).transpose(0, 2, 1, 3).reshape(B, N, D)
        x = x + ctx @ blk['wo'] + blk['bo']
        h2 = ln(x, blk['ln2_scale'], blk['ln2_shift'])
        f = h2 @ blk['w1'] + blk['b1']
        f = f * jax.nn.sigmoid(f)
        x = x + f @ blk['w2'] + blk['b2']
    x = ln(x, params['fn_scale'], params['fn_shift'])
    return x @ params['w_out']


# ----------------------------- parameter init ---------------------------------

def init_params(key, cfg):
    D = cfg['emb_dim']; V = cfg['vocab_size']
    L = cfg['n_layers']; C = cfg['context_length']
    keys = jax.random.split(key, 3 + 4 * L)

    def w(k, shape):
        return jax.random.normal(k, shape, jnp.float32) * 0.02

    params = {
        'tok_emb': w(keys[0], (V, D)),
        'pos_emb': w(keys[1], (C, D)),
        'w_out': w(keys[2], (D, V)),
        'fn_scale': jnp.ones((D,), jnp.float32),
        'fn_shift': jnp.zeros((D,), jnp.float32),
        'blocks': [],
    }
    ki = 3
    for _ in range(L):
        blk = {
            'ln1_scale': jnp.ones((D,), jnp.float32), 'ln1_shift': jnp.zeros((D,), jnp.float32),
            'ln2_scale': jnp.ones((D,), jnp.float32), 'ln2_shift': jnp.zeros((D,), jnp.float32),
            # Fused QKV weight: columns [0:D)=Q, [D:2D)=K, [2D:3D)=V
            'wqkv': w(keys[ki + 0], (D, 3 * D)), 'bqkv': jnp.zeros((3 * D,), jnp.float32),
            'wo': w(keys[ki + 1], (D, D)), 'bo': jnp.zeros((D,), jnp.float32),
            'w1': w(keys[ki + 2], (D, 4 * D)), 'b1': jnp.zeros((4 * D,), jnp.float32),
            'w2': w(keys[ki + 3], (4 * D, D)), 'b2': jnp.zeros((D,), jnp.float32),
        }
        ki += 4
        params['blocks'].append(blk)
    return params


# ----------------------------- main --------------------------------------------

if __name__ == "__main__":
    cfg = dict(vocab_size=256, context_length=16, emb_dim=32,
               n_heads=4, n_layers=2, drop_rate=0.0)
    key = jax.random.PRNGKey(0)
    pkey, ikey = jax.random.split(key)
    params = init_params(pkey, cfg)

    B, N = 2, 8
    ids = jax.random.randint(ikey, (B, N), 0, cfg['vocab_size'], dtype=jnp.int32)

    fwd = jax.jit(functools.partial(gpt1_forward, cfg=cfg))
    logits = fwd(ids, params)
    jax.block_until_ready(logits)

    assert logits.shape == (B, N, cfg['vocab_size'])
    assert bool(jnp.all(jnp.isfinite(logits)))

    # Parity check against a pure-JAX reference of the PyTorch module.
    ref = jax.jit(functools.partial(gpt1_reference, cfg=cfg))(ids, params)
    ref = ref.reshape(B, N, cfg['vocab_size'])
    jax.block_until_ready(ref)
    assert bool(jnp.allclose(logits, ref, atol=1e-3, rtol=1e-2))

    print("KERNEL_OK")
</pallas_src>

<mosaic_0001>
module attributes {stable_mosaic.version = 11 : i64} {
  func.func @gpt1_kernel(%arg0: memref<16x32xf32, #tpu.memory_space<vmem>>, %arg1: memref<16x16xf32, #tpu.memory_space<vmem>>, %arg2: memref<16x16xf32, #tpu.memory_space<vmem>>, %arg3: memref<2x1x32xf32, #tpu.memory_space<vmem>>, %arg4: memref<2x1x32xf32, #tpu.memory_space<vmem>>, %arg5: memref<2x32x96xf32, #tpu.memory_space<vmem>>, %arg6: memref<2x1x96xf32, #tpu.memory_space<vmem>>, %arg7: memref<2x32x32xf32, #tpu.memory_space<vmem>>, %arg8: memref<2x1x32xf32, #tpu.memory_space<vmem>>, %arg9: memref<2x1x32xf32, #tpu.memory_space<vmem>>, %arg10: memref<2x1x32xf32, #tpu.memory_space<vmem>>, %arg11: memref<2x32x128xf32, #tpu.memory_space<vmem>>, %arg12: memref<2x1x128xf32, #tpu.memory_space<vmem>>, %arg13: memref<2x128x32xf32, #tpu.memory_space<vmem>>, %arg14: memref<2x1x32xf32, #tpu.memory_space<vmem>>, %arg15: memref<1x32xf32, #tpu.memory_space<vmem>>, %arg16: memref<1x32xf32, #tpu.memory_space<vmem>>, %arg17: memref<32x256xf32, #tpu.memory_space<vmem>>, %arg18: memref<16x256xf32, #tpu.memory_space<vmem>>) attributes {dimension_semantics = [], scalar_prefetch = 0 : i64, scratch_operands = 0 : i64, tpu.core_type = #tpu.core_type<tc>} {
    %c0 = arith.constant 0 : index
    %c0_0 = arith.constant 0 : index
    %0 = vector.load %arg0[%c0, %c0_0] : memref<16x32xf32, #tpu.memory_space<vmem>>, vector<16x32xf32>
    %c0_1 = arith.constant 0 : index
    %c0_2 = arith.constant 0 : index
    %1 = vector.load %arg1[%c0_1, %c0_2] : memref<16x16xf32, #tpu.memory_space<vmem>>, vector<16x16xf32>
    %c0_3 = arith.constant 0 : index
    %c0_4 = arith.constant 0 : index
    %2 = vector.load %arg2[%c0_3, %c0_4] : memref<16x16xf32, #tpu.memory_space<vmem>>, vector<16x16xf32>
    %3 = tpu.iota {dimensions = array<i32: 0>} : vector<8x8xi32>
    %4 = tpu.iota {dimensions = array<i32: 1>} : vector<8x8xi32>
    %5 = arith.cmpi sle, %4, %3 : vector<8x8xi32>
    %6 = vector.shape_cast %5 : vector<8x8xi1> to vector<1x8x8xi1>
    %c0_5 = arith.constant 0 : index
    %c0_6 = arith.constant 0 : index
    %c0_7 = arith.constant 0 : index
    %7 = vector.load %arg3[%c0_5, %c0_6, %c0_7] : memref<2x1x32xf32, #tpu.memory_space<vmem>>, vector<1x1x32xf32>
    %8 = vector.shape_cast %7 : vector<1x1x32xf32> to vector<1x32xf32>
    %c0_8 = arith.constant 0 : index
    %c0_9 = arith.constant 0 : index
    %c0_10 = arith.constant 0 : index
    %9 = vector.load %arg4[%c0_8, %c0_9, %c0_10] : memref<2x1x32xf32, #tpu.memory_space<vmem>>, vector<1x1x32xf32>
    %10 = vector.shape_cast %9 : vector<1x1x32xf32> to vector<1x32xf32>
    %cst = arith.constant dense<0.000000e+00> : vector<16xf32>
    %11 = vector.multi_reduction <add>, %0, %cst [1] : vector<16x32xf32> to vector<16xf32>
    %12 = vector.shape_cast %11 : vector<16xf32> to vector<16x1xf32>
    %cst_11 = arith.constant 3.200000e+01 : f32
    %13 = vector.broadcast %cst_11 : f32 to vector<16x1xf32>
    %14 = arith.divf %12, %13 : vector<16x1xf32>
    %15 = vector.broadcast %14 : vector<16x1xf32> to vector<16x32xf32>
    %16 = arith.subf %0, %15 : vector<16x32xf32>
    %17 = arith.mulf %16, %16 : vector<16x32xf32>
    %cst_12 = arith.constant dense<0.000000e+00> : vector<16xf32>
    %18 = vector.multi_reduction <add>, %17, %cst_12 [1] : vector<16x32xf32> to vector<16xf32>
    %19 = vector.shape_cast %18 : vector<16xf32> to vector<16x1xf32>
    %cst_13 = arith.constant 3.200000e+01 : f32
    %20 = vector.broadcast %cst_13 : f32 to vector<16x1xf32>
    %21 = arith.divf %19, %20 : vector<16x1xf32>
    %22 = vector.broadcast %14 : vector<16x1xf32> to vector<16x32xf32>
    %23 = arith.subf %0, %22 : vector<16x32xf32>
    %cst_14 = arith.constant 9.99999974E-6 : f32
    %24 = vector.broadcast %cst_14 : f32 to vector<16x1xf32>
    %25 = arith.addf %21, %24 : vector<16x1xf32>
    %26 = math.rsqrt %25 : vector<16x1xf32>
    %27 = vector.broadcast %26 : vector<16x1xf32> to vector<16x32xf32>
    %28 = arith.mulf %23, %27 : vector<16x32xf32>
    %29 = vector.broadcast %8 : vector<1x32xf32> to vector<16x32xf32>
    %30 = arith.mulf %29, %28 : vector<16x32xf32>
    %31 = vector.broadcast %10 : vector<1x32xf32> to vector<16x32xf32>
    %32 = arith.addf %30, %31 : vector<16x32xf32>
    %c0_15 = arith.constant 0 : index
    %c0_16 = arith.constant 0 : index
    %c0_17 = arith.constant 0 : index
    %33 = vector.load %arg5[%c0_15, %c0_16, %c0_17] : memref<2x32x96xf32, #tpu.memory_space<vmem>>, vector<1x32x96xf32>
    %34 = vector.shape_cast %33 : vector<1x32x96xf32> to vector<32x96xf32>
    %cst_18 = arith.constant dense<0.000000e+00> : vector<16x96xf32>
    %35 = tpu.matmul %32, %34, %cst_18 {dimension_numbers = #tpu.dot_dimension_numbers<[1], [0], [0], [1], [0, 0, 1, 1], [], []>} : vector<16x32xf32>, vector<32x96xf32>, vector<16x96xf32> -> vector<16x96xf32>
    %c0_19 = arith.constant 0 : index
    %c0_20 = arith.constant 0 : index
    %c0_21 = arith.constant 0 : index
    %36 = vector.load %arg6[%c0_19, %c0_20, %c0_21] : memref<2x1x96xf32, #tpu.memory_space<vmem>>, vector<1x1x96xf32>
    %37 = vector.shape_cast %36 : vector<1x1x96xf32> to vector<1x96xf32>
    %38 = vector.broadcast %37 : vector<1x96xf32> to vector<16x96xf32>
    %39 = arith.addf %35, %38 : vector<16x96xf32>
    %40 = vector.extract_strided_slice %39 {offsets = [0, 0], sizes = [16, 16], strides = [1, 1]} : vector<16x96xf32> to vector<16x16xf32>
    %41 = vector.extract_strided_slice %39 {offsets = [0, 16], sizes = [16, 16], strides = [1, 1]} : vector<16x96xf32> to vector<16x16xf32>
    %42 = vector.extract_strided_slice %39 {offsets = [0, 32], sizes = [16, 16], strides = [1, 1]} : vector<16x96xf32> to vector<16x16xf32>
    %43 = vector.extract_strided_slice %39 {offsets = [0, 48], sizes = [16, 16], strides = [1, 1]} : vector<16x96xf32> to vector<16x16xf32>
    %44 = vector.extract_strided_slice %39 {offsets = [0, 64], sizes = [16, 32], strides = [1, 1]} : vector<16x96xf32> to vector<16x32xf32>
    %45 = arith.mulf %40, %2 : vector<16x16xf32>
    %46 = arith.mulf %41, %1 : vector<16x16xf32>
    %47 = arith.subf %45, %46 : vector<16x16xf32>
    %48 = arith.mulf %40, %1 : vector<16x16xf32>
    %49 = arith.mulf %41, %2 : vector<16x16xf32>
    %50 = arith.subf %48, %49 : vector<16x16xf32>
    %51 = tpu.concatenate %47, %50 in 1 : vector<16x16xf32>, vector<16x16xf32> -> vector<16x32xf32>
    %52 = arith.mulf %42, %2 : vector<16x16xf32>
    %53 = arith.mulf %43, %1 : vector<16x16xf32>
    %54 = arith.subf %52, %53 : vector<16x16xf32>
    %55 = arith.mulf %42, %1 : vector<16x16xf32>
    %56 = arith.mulf %43, %2 : vector<16x16xf32>
    %57 = arith.subf %55, %56 : vector<16x16xf32>
    %58 = tpu.concatenate %54, %57 in 1 : vector<16x16xf32>, vector<16x16xf32> -> vector<16x32xf32>
    %59 = vector.extract_strided_slice %51 {offsets = [0, 0], sizes = [16, 8], strides = [1, 1]} : vector<16x32xf32> to vector<16x8xf32>
    %60 = vector.shape_cast %59 : vector<16x8xf32> to vector<2x8x8xf32>
    %61 = vector.extract_strided_slice %51 {offsets = [0, 8], sizes = [16, 8], strides = [1, 1]} : vector<16x32xf32> to vector<16x8xf32>
    %62 = vector.shape_cast %61 : vector<16x8xf32> to vector<2x8x8xf32>
    %63 = vector.extract_strided_slice %51 {offsets = [0, 16], sizes = [16, 8], strides = [1, 1]} : vector<16x32xf32> to vector<16x8xf32>
    %64 = vector.shape_cast %63 : vector<16x8xf32> to vector<2x8x8xf32>
    %65 = vector.extract_strided_slice %51 {offsets = [0, 24], sizes = [16, 8], strides = [1, 1]} : vector<16x32xf32> to vector<16x8xf32>
    %66 = vector.shape_cast %65 : vector<16x8xf32> to vector<2x8x8xf32>
    %67 = tpu.concatenate %60, %62, %64, %66 in 0 : vector<2x8x8xf32>, vector<2x8x8xf32>, vector<2x8x8xf32>, vector<2x8x8xf32> -> vector<8x8x8xf32>
    %cst_22 = arith.constant 0.353553385 : f32
    %68 = vector.broadcast %cst_22 : f32 to vector<8x8x8xf32>
    %69 = arith.mulf %67, %68 : vector<8x8x8xf32>
    %70 = vector.extract_strided_slice %58 {offsets = [0, 0], sizes = [16, 8], strides = [1, 1]} : vector<16x32xf32> to vector<16x8xf32>
    %71 = vector.shape_cast %70 : vector<16x8xf32> to vector<2x8x8xf32>
    %72 = vector.extract_strided_slice %58 {offsets = [0, 8], sizes = [16, 8], strides = [1, 1]} : vector<16x32xf32> to vector<16x8xf32>
    %73 = vector.shape_cast %72 : vector<16x8xf32> to vector<2x8x8xf32>
    %74 = vector.extract_strided_slice %58 {offsets = [0, 16], sizes = [16, 8], strides = [1, 1]} : vector<16x32xf32> to vector<16x8xf32>
    %75 = vector.shape_cast %74 : vector<16x8xf32> to vector<2x8x8xf32>
    %76 = vector.extract_strided_slice %58 {offsets = [0, 24], sizes = [16, 8], strides = [1, 1]} : vector<16x32xf32> to vector<16x8xf32>
    %77 = vector.shape_cast %76 : vector<16x8xf32> to vector<2x8x8xf32>
    %78 = tpu.concatenate %71, %73, %75, %77 in 0 : vector<2x8x8xf32>, vector<2x8x8xf32>, vector<2x8x8xf32>, vector<2x8x8xf32> -> vector<8x8x8xf32>
    %79 = vector.extract_strided_slice %44 {offsets = [0, 0], sizes = [16, 8], strides = [1, 1]} : vector<16x32xf32> to vector<16x8xf32>
    %80 = vector.shape_cast %79 : vector<16x8xf32> to vector<2x8x8xf32>
    %81 = vector.extract_strided_slice %44 {offsets = [0, 8], sizes = [16, 8], strides = [1, 1]} : vector<16x32xf32> to vector<16x8xf32>
    %82 = vector.shape_cast %81 : vector<16x8xf32> to vector<2x8x8xf32>
    %83 = vector.extract_strided_slice %44 {offsets = [0, 16], sizes = [16, 8], strides = [1, 1]} : vector<16x32xf32> to vector<16x8xf32>
    %84 = vector.shape_cast %83 : vector<16x8xf32> to vector<2x8x8xf32>
    %85 = vector.extract_strided_slice %44 {offsets = [0, 24], sizes = [16, 8], strides = [1, 1]} : vector<16x32xf32> to vector<16x8xf32>
    %86 = vector.shape_cast %85 : vector<16x8xf32> to vector<2x8x8xf32>
    %87 = tpu.concatenate %80, %82, %84, %86 in 0 : vector<2x8x8xf32>, vector<2x8x8xf32>, vector<2x8x8xf32>, vector<2x8x8xf32> -> vector<8x8x8xf32>
    "tpu.trace_start"() <{level = 10 : i32, message = "bqd,bkd->bqk"}> : () -> ()
    %cst_23 = arith.constant dense<0.000000e+00> : vector<8x8x8xf32>
    %88 = tpu.matmul %69, %78, %cst_23 {dimension_numbers = #tpu.dot_dimension_numbers<[2], [2], [1], [1], [0, 0, 0, 1, 1, 1], [0], [0]>} : vector<8x8x8xf32>, vector<8x8x8xf32>, vector<8x8x8xf32> -> vector<8x8x8xf32>
    %cst_24 = arith.constant -1.000000e+30 : f32
    "tpu.trace_stop"() : () -> ()
    %89 = vector.shape_cast %6 : vector<1x8x8xi1> to vector<1x8x8xi1>
    %90 = vector.broadcast %89 : vector<1x8x8xi1> to vector<8x8x8xi1>
    %91 = vector.broadcast %cst_24 : f32 to vector<8x8x8xf32>
    %92 = arith.select %90, %88, %91 : vector<8x8x8xi1>, vector<8x8x8xf32>
    %cst_25 = arith.constant dense<0xFF800000> : vector<8x8xf32>
    %93 = vector.multi_reduction <maximumf>, %92, %cst_25 [2] : vector<8x8x8xf32> to vector<8x8xf32>
    %94 = vector.shape_cast %93 : vector<8x8xf32> to vector<8x8x1xf32>
    %95 = vector.broadcast %94 : vector<8x8x1xf32> to vector<8x8x8xf32>
    %96 = arith.subf %92, %95 : vector<8x8x8xf32>
    %97 = math.exp %96 : vector<8x8x8xf32>
    %cst_26 = arith.constant dense<0.000000e+00> : vector<8x8xf32>
    %98 = vector.multi_reduction <add>, %97, %cst_26 [2] : vector<8x8x8xf32> to vector<8x8xf32>
    %99 = vector.shape_cast %98 : vector<8x8xf32> to vector<8x8x1xf32>
    %100 = vector.broadcast %99 : vector<8x8x1xf32> to vector<8x8x8xf32>
    %101 = arith.divf %97, %100 : vector<8x8x8xf32>
    "tpu.trace_start"() <{level = 10 : i32, message = "bqk,bkd->bqd"}> : () -> ()
    %cst_27 = arith.constant dense<0.000000e+00> : vector<8x8x8xf32>
    %102 = tpu.matmul %101, %87, %cst_27 {dimension_numbers = #tpu.dot_dimension_numbers<[2], [1], [1], [2], [0, 0, 0, 1, 1, 2], [0], [0]>} : vector<8x8x8xf32>, vector<8x8x8xf32>, vector<8x8x8xf32> -> vector<8x8x8xf32>
    "tpu.trace_stop"() : () -> ()
    %103 = vector.extract_strided_slice %102 {offsets = [0, 0, 0], sizes = [2, 8, 8], strides = [1, 1, 1]} : vector<8x8x8xf32> to vector<2x8x8xf32>
    %104 = vector.shape_cast %103 : vector<2x8x8xf32> to vector<16x8xf32>
    %105 = vector.extract_strided_slice %102 {offsets = [2, 0, 0], sizes = [2, 8, 8], strides = [1, 1, 1]} : vector<8x8x8xf32> to vector<2x8x8xf32>
    %106 = vector.shape_cast %105 : vector<2x8x8xf32> to vector<16x8xf32>
    %107 = vector.extract_strided_slice %102 {offsets = [4, 0, 0], sizes = [2, 8, 8], strides = [1, 1, 1]} : vector<8x8x8xf32> to vector<2x8x8xf32>
    %108 = vector.shape_cast %107 : vector<2x8x8xf32> to vector<16x8xf32>
    %109 = vector.extract_strided_slice %102 {offsets = [6, 0, 0], sizes = [2, 8, 8], strides = [1, 1, 1]} : vector<8x8x8xf32> to vector<2x8x8xf32>
    %110 = vector.shape_cast %109 : vector<2x8x8xf32> to vector<16x8xf32>
    %111 = tpu.concatenate %104, %106, %108, %110 in 1 : vector<16x8xf32>, vector<16x8xf32>, vector<16x8xf32>, vector<16x8xf32> -> vector<16x32xf32>
    %c0_28 = arith.constant 0 : index
    %c0_29 = arith.constant 0 : index
    %c0_30 = arith.constant 0 : index
    %112 = vector.load %arg7[%c0_28, %c0_29, %c0_30] : memref<2x32x32xf32, #tpu.memory_space<vmem>>, vector<1x32x32xf32>
    %113 = vector.shape_cast %112 : vector<1x32x32xf32> to vector<32x32xf32>
    %cst_31 = arith.constant dense<0.000000e+00> : vector<16x32xf32>
    %114 = tpu.matmul %111, %113, %cst_31 {dimension_numbers = #tpu.dot_dimension_numbers<[1], [0], [0], [1], [0, 0, 1, 1], [], []>} : vector<16x32xf32>, vector<32x32xf32>, vector<16x32xf32> -> vector<16x32xf32>
    %c0_32 = arith.constant 0 : index
    %c0_33 = arith.constant 0 : index
    %c0_34 = arith.constant 0 : index
    %115 = vector.load %arg8[%c0_32, %c0_33, %c0_34] : memref<2x1x32xf32, #tpu.memory_space<vmem>>, vector<1x1x32xf32>
    %116 = vector.shape_cast %115 : vector<1x1x32xf32> to vector<1x32xf32>
    %117 = vector.broadcast %116 : vector<1x32xf32> to vector<16x32xf32>
    %118 = arith.addf %114, %117 : vector<16x32xf32>
    %119 = arith.addf %0, %118 : vector<16x32xf32>
    %c0_35 = arith.constant 0 : index
    %c0_36 = arith.constant 0 : index
    %c0_37 = arith.constant 0 : index
    %120 = vector.load %arg9[%c0_35, %c0_36, %c0_37] : memref<2x1x32xf32, #tpu.memory_space<vmem>>, vector<1x1x32xf32>
    %121 = vector.shape_cast %120 : vector<1x1x32xf32> to vector<1x32xf32>
    %c0_38 = arith.constant 0 : index
    %c0_39 = arith.constant 0 : index
    %c0_40 = arith.constant 0 : index
    %122 = vector.load %arg10[%c0_38, %c0_39, %c0_40] : memref<2x1x32xf32, #tpu.memory_space<vmem>>, vector<1x1x32xf32>
    %123 = vector.shape_cast %122 : vector<1x1x32xf32> to vector<1x32xf32>
    %cst_41 = arith.constant dense<0.000000e+00> : vector<16xf32>
    %124 = vector.multi_reduction <add>, %119, %cst_41 [1] : vector<16x32xf32> to vector<16xf32>
    %125 = vector.shape_cast %124 : vector<16xf32> to vector<16x1xf32>
    %cst_42 = arith.constant 3.200000e+01 : f32
    %126 = vector.broadcast %cst_42 : f32 to vector<16x1xf32>
    %127 = arith.divf %125, %126 : vector<16x1xf32>
    %128 = vector.broadcast %127 : vector<16x1xf32> to vector<16x32xf32>
    %129 = arith.subf %119, %128 : vector<16x32xf32>
    %130 = arith.mulf %129, %129 : vector<16x32xf32>
    %cst_43 = arith.constant dense<0.000000e+00> : vector<16xf32>
    %131 = vector.multi_reduction <add>, %130, %cst_43 [1] : vector<16x32xf32> to vector<16xf32>
    %132 = vector.shape_cast %131 : vector<16xf32> to vector<16x1xf32>
    %cst_44 = arith.constant 3.200000e+01 : f32
    %133 = vector.broadcast %cst_44 : f32 to vector<16x1xf32>
    %134 = arith.divf %132, %133 : vector<16x1xf32>
    %135 = vector.broadcast %127 : vector<16x1xf32> to vector<16x32xf32>
    %136 = arith.subf %119, %135 : vector<16x32xf32>
    %cst_45 = arith.constant 9.99999974E-6 : f32
    %137 = vector.broadcast %cst_45 : f32 to vector<16x1xf32>
    %138 = arith.addf %134, %137 : vector<16x1xf32>
    %139 = math.rsqrt %138 : vector<16x1xf32>
    %140 = vector.broadcast %139 : vector<16x1xf32> to vector<16x32xf32>
    %141 = arith.mulf %136, %140 : vector<16x32xf32>
    %142 = vector.broadcast %121 : vector<1x32xf32> to vector<16x32xf32>
    %143 = arith.mulf %142, %141 : vector<16x32xf32>
    %144 = vector.broadcast %123 : vector<1x32xf32> to vector<16x32xf32>
    %145 = arith.addf %143, %144 : vector<16x32xf32>
    %c0_46 = arith.constant 0 : index
    %c0_47 = arith.constant 0 : index
    %c0_48 = arith.constant 0 : index
    %146 = vector.load %arg11[%c0_46, %c0_47, %c0_48] : memref<2x32x128xf32, #tpu.memory_space<vmem>>, vector<1x32x128xf32>
    %147 = vector.shape_cast %146 : vector<1x32x128xf32> to vector<32x128xf32>
    %cst_49 = arith.constant dense<0.000000e+00> : vector<16x128xf32>
    %148 = tpu.matmul %145, %147, %cst_49 {dimension_numbers = #tpu.dot_dimension_numbers<[1], [0], [0], [1], [0, 0, 1, 1], [], []>} : vector<16x32xf32>, vector<32x128xf32>, vector<16x128xf32> -> vector<16x128xf32>
    %c0_50 = arith.constant 0 : index
    %c0_51 = arith.constant 0 : index
    %c0_52 = arith.constant 0 : index
    %149 = vector.load %arg12[%c0_50, %c0_51, %c0_52] : memref<2x1x128xf32, #tpu.memory_space<vmem>>, vector<1x1x128xf32>
    %150 = vector.shape_cast %149 : vector<1x1x128xf32> to vector<1x128xf32>
    %151 = vector.broadcast %150 : vector<1x128xf32> to vector<16x128xf32>
    %152 = arith.addf %148, %151 : vector<16x128xf32>
    %153 = arith.negf %152 : vector<16x128xf32>
    %154 = math.exp %153 : vector<16x128xf32>
    %cst_53 = arith.constant 1.000000e+00 : f32
    %155 = vector.broadcast %cst_53 : f32 to vector<16x128xf32>
    %156 = arith.addf %155, %154 : vector<16x128xf32>
    %157 = arith.divf %155, %156 : vector<16x128xf32>
    %158 = arith.mulf %152, %157 : vector<16x128xf32>
    %c0_54 = arith.constant 0 : index
    %c0_55 = arith.constant 0 : index
    %c0_56 = arith.constant 0 : index
    %159 = vector.load %arg13[%c0_54, %c0_55, %c0_56] : memref<2x128x32xf32, #tpu.memory_space<vmem>>, vector<1x128x32xf32>
    %160 = vector.shape_cast %159 : vector<1x128x32xf32> to vector<128x32xf32>
    %cst_57 = arith.constant dense<0.000000e+00> : vector<16x32xf32>
    %161 = tpu.matmul %158, %160, %cst_57 {dimension_numbers = #tpu.dot_dimension_numbers<[1], [0], [0], [1], [0, 0, 1, 1], [], []>} : vector<16x128xf32>, vector<128x32xf32>, vector<16x32xf32> -> vector<16x32xf32>
    %c0_58 = arith.constant 0 : index
    %c0_59 = arith.constant 0 : index
    %c0_60 = arith.constant 0 : index
    %162 = vector.load %arg14[%c0_58, %c0_59, %c0_60] : memref<2x1x32xf32, #tpu.memory_space<vmem>>, vector<1x1x32xf32>
    %163 = vector.shape_cast %162 : vector<1x1x32xf32> to vector<1x32xf32>
    %164 = vector.broadcast %163 : vector<1x32xf32> to vector<16x32xf32>
    %165 = arith.addf %161, %164 : vector<16x32xf32>
    %166 = arith.addf %119, %165 : vector<16x32xf32>
    %c1 = arith.constant 1 : index
    %c0_61 = arith.constant 0 : index
    %c0_62 = arith.constant 0 : index
    %167 = vector.load %arg3[%c1, %c0_61, %c0_62] : memref<2x1x32xf32, #tpu.memory_space<vmem>>, vector<1x1x32xf32>
    %168 = vector.shape_cast %167 : vector<1x1x32xf32> to vector<1x32xf32>
    %c1_63 = arith.constant 1 : index
    %c0_64 = arith.constant 0 : index
    %c0_65 = arith.constant 0 : index
    %169 = vector.load %arg4[%c1_63, %c0_64, %c0_65] : memref<2x1x32xf32, #tpu.memory_space<vmem>>, vector<1x1x32xf32>
    %170 = vector.shape_cast %169 : vector<1x1x32xf32> to vector<1x32xf32>
    %cst_66 = arith.constant dense<0.000000e+00> : vector<16xf32>
    %171 = vector.multi_reduction <add>, %166, %cst_66 [1] : vector<16x32xf32> to vector<16xf32>
    %172 = vector.shape_cast %171 : vector<16xf32> to vector<16x1xf32>
    %cst_67 = arith.constant 3.200000e+01 : f32
    %173 = vector.broadcast %cst_67 : f32 to vector<16x1xf32>
    %174 = arith.divf %172, %173 : vector<16x1xf32>
    %175 = vector.broadcast %174 : vector<16x1xf32> to vector<16x32xf32>
    %176 = arith.subf %166, %175 : vector<16x32xf32>
    %177 = arith.mulf %176, %176 : vector<16x32xf32>
    %cst_68 = arith.constant dense<0.000000e+00> : vector<16xf32>
    %178 = vector.multi_reduction <add>, %177, %cst_68 [1] : vector<16x32xf32> to vector<16xf32>
    %179 = vector.shape_cast %178 : vector<16xf32> to vector<16x1xf32>
    %cst_69 = arith.constant 3.200000e+01 : f32
    %180 = vector.broadcast %cst_69 : f32 to vector<16x1xf32>
    %181 = arith.divf %179, %180 : vector<16x1xf32>
    %182 = vector.broadcast %174 : vector<16x1xf32> to vector<16x32xf32>
    %183 = arith.subf %166, %182 : vector<16x32xf32>
    %cst_70 = arith.constant 9.99999974E-6 : f32
    %184 = vector.broadcast %cst_70 : f32 to vector<16x1xf32>
    %185 = arith.addf %181, %184 : vector<16x1xf32>
    %186 = math.rsqrt %185 : vector<16x1xf32>
    %187 = vector.broadcast %186 : vector<16x1xf32> to vector<16x32xf32>
    %188 = arith.mulf %183, %187 : vector<16x32xf32>
    %189 = vector.broadcast %168 : vector<1x32xf32> to vector<16x32xf32>
    %190 = arith.mulf %189, %188 : vector<16x32xf32>
    %191 = vector.broadcast %170 : vector<1x32xf32> to vector<16x32xf32>
    %192 = arith.addf %190, %191 : vector<16x32xf32>
    %c1_71 = arith.constant 1 : index
    %c0_72 = arith.constant 0 : index
    %c0_73 = arith.constant 0 : index
    %193 = vector.load %arg5[%c1_71, %c0_72, %c0_73] : memref<2x32x96xf32, #tpu.memory_space<vmem>>, vector<1x32x96xf32>
    %194 = vector.shape_cast %193 : vector<1x32x96xf32> to vector<32x96xf32>
    %cst_74 = arith.constant dense<0.000000e+00> : vector<16x96xf32>
    %195 = tpu.matmul %192, %194, %cst_74 {dimension_numbers = #tpu.dot_dimension_numbers<[1], [0], [0], [1], [0, 0, 1, 1], [], []>} : vector<16x32xf32>, vector<32x96xf32>, vector<16x96xf32> -> vector<16x96xf32>
    %c1_75 = arith.constant 1 : index
    %c0_76 = arith.constant 0 : index
    %c0_77 = arith.constant 0 : index
    %196 = vector.load %arg6[%c1_75, %c0_76, %c0_77] : memref<2x1x96xf32, #tpu.memory_space<vmem>>, vector<1x1x96xf32>
    %197 = vector.shape_cast %196 : vector<1x1x96xf32> to vector<1x96xf32>
    %198 = vector.broadcast %197 : vector<1x96xf32> to vector<16x96xf32>
    %199 = arith.addf %195, %198 : vector<16x96xf32>
    %200 = vector.extract_strided_slice %199 {offsets = [0, 0], sizes = [16, 16], strides = [1, 1]} : vector<16x96xf32> to vector<16x16xf32>
    %201 = vector.extract_strided_slice %199 {offsets = [0, 16], sizes = [16, 16], strides = [1, 1]} : vector<16x96xf32> to vector<16x16xf32>
    %202 = vector.extract_strided_slice %199 {offsets = [0, 32], sizes = [16, 16], strides = [1, 1]} : vector<16x96xf32> to vector<16x16xf32>
    %203 = vector.extract_strided_slice %199 {offsets = [0, 48], sizes = [16, 16], strides = [1, 1]} : vector<16x96xf32> to vector<16x16xf32>
    %204 = vector.extract_strided_slice %199 {offsets = [0, 64], sizes = [16, 32], strides = [1, 1]} : vector<16x96xf32> to vector<16x32xf32>
    %205 = arith.mulf %200, %2 : vector<16x16xf32>
    %206 = arith.mulf %201, %1 : vector<16x16xf32>
    %207 = arith.subf %205, %206 : vector<16x16xf32>
    %208 = arith.mulf %200, %1 : vector<16x16xf32>
    %209 = arith.mulf %201, %2 : vector<16x16xf32>
    %210 = arith.subf %208, %209 : vector<16x16xf32>
    %211 = tpu.concatenate %207, %210 in 1 : vector<16x16xf32>, vector<16x16xf32> -> vector<16x32xf32>
    %212 = arith.mulf %202, %2 : vector<16x16xf32>
    %213 = arith.mulf %203, %1 : vector<16x16xf32>
    %214 = arith.subf %212, %213 : vector<16x16xf32>
    %215 = arith.mulf %202, %1 : vector<16x16xf32>
    %216 = arith.mulf %203, %2 : vector<16x16xf32>
    %217 = arith.subf %215, %216 : vector<16x16xf32>
    %218 = tpu.concatenate %214, %217 in 1 : vector<16x16xf32>, vector<16x16xf32> -> vector<16x32xf32>
    %219 = vector.extract_strided_slice %211 {offsets = [0, 0], sizes = [16, 8], strides = [1, 1]} : vector<16x32xf32> to vector<16x8xf32>
    %220 = vector.shape_cast %219 : vector<16x8xf32> to vector<2x8x8xf32>
    %221 = vector.extract_strided_slice %211 {offsets = [0, 8], sizes = [16, 8], strides = [1, 1]} : vector<16x32xf32> to vector<16x8xf32>
    %222 = vector.shape_cast %221 : vector<16x8xf32> to vector<2x8x8xf32>
    %223 = vector.extract_strided_slice %211 {offsets = [0, 16], sizes = [16, 8], strides = [1, 1]} : vector<16x32xf32> to vector<16x8xf32>
    %224 = vector.shape_cast %223 : vector<16x8xf32> to vector<2x8x8xf32>
    %225 = vector.extract_strided_slice %211 {offsets = [0, 24], sizes = [16, 8], strides = [1, 1]} : vector<16x32xf32> to vector<16x8xf32>
    %226 = vector.shape_cast %225 : vector<16x8xf32> to vector<2x8x8xf32>
    %227 = tpu.concatenate %220, %222, %224, %226 in 0 : vector<2x8x8xf32>, vector<2x8x8xf32>, vector<2x8x8xf32>, vector<2x8x8xf32> -> vector<8x8x8xf32>
    %cst_78 = arith.constant 0.353553385 : f32
    %228 = vector.broadcast %cst_78 : f32 to vector<8x8x8xf32>
    %229 = arith.mulf %227, %228 : vector<8x8x8xf32>
    %230 = vector.extract_strided_slice %218 {offsets = [0, 0], sizes = [16, 8], strides = [1, 1]} : vector<16x32xf32> to vector<16x8xf32>
    %231 = vector.shape_cast %230 : vector<16x8xf32> to vector<2x8x8xf32>
    %232 = vector.extract_strided_slice %218 {offsets = [0, 8], sizes = [16, 8], strides = [1, 1]} : vector<16x32xf32> to vector<16x8xf32>
    %233 = vector.shape_cast %232 : vector<16x8xf32> to vector<2x8x8xf32>
    %234 = vector.extract_strided_slice %218 {offsets = [0, 16], sizes = [16, 8], strides = [1, 1]} : vector<16x32xf32> to vector<16x8xf32>
    %235 = vector.shape_cast %234 : vector<16x8xf32> to vector<2x8x8xf32>
    %236 = vector.extract_strided_slice %218 {offsets = [0, 24], sizes = [16, 8], strides = [1, 1]} : vector<16x32xf32> to vector<16x8xf32>
    %237 = vector.shape_cast %236 : vector<16x8xf32> to vector<2x8x8xf32>
    %238 = tpu.concatenate %231, %233, %235, %237 in 0 : vector<2x8x8xf32>, vector<2x8x8xf32>, vector<2x8x8xf32>, vector<2x8x8xf32> -> vector<8x8x8xf32>
    %239 = vector.extract_strided_slice %204 {offsets = [0, 0], sizes = [16, 8], strides = [1, 1]} : vector<16x32xf32> to vector<16x8xf32>
    %240 = vector.shape_cast %239 : vector<16x8xf32> to vector<2x8x8xf32>
    %241 = vector.extract_strided_slice %204 {offsets = [0, 8], sizes = [16, 8], strides = [1, 1]} : vector<16x32xf32> to vector<16x8xf32>
    %242 = vector.shape_cast %241 : vector<16x8xf32> to vector<2x8x8xf32>
    %243 = vector.extract_strided_slice %204 {offsets = [0, 16], sizes = [16, 8], strides = [1, 1]} : vector<16x32xf32> to vector<16x8xf32>
    %244 = vector.shape_cast %243 : vector<16x8xf32> to vector<2x8x8xf32>
    %245 = vector.extract_strided_slice %204 {offsets = [0, 24], sizes = [16, 8], strides = [1, 1]} : vector<16x32xf32> to vector<16x8xf32>
    %246 = vector.shape_cast %245 : vector<16x8xf32> to vector<2x8x8xf32>
    %247 = tpu.concatenate %240, %242, %244, %246 in 0 : vector<2x8x8xf32>, vector<2x8x8xf32>, vector<2x8x8xf32>, vector<2x8x8xf32> -> vector<8x8x8xf32>
    "tpu.trace_start"() <{level = 10 : i32, message = "bqd,bkd->bqk"}> : () -> ()
    %cst_79 = arith.constant dense<0.000000e+00> : vector<8x8x8xf32>
    %248 = tpu.matmul %229, %238, %cst_79 {dimension_numbers = #tpu.dot_dimension_numbers<[2], [2], [1], [1], [0, 0, 0, 1, 1, 1], [0], [0]>} : vector<8x8x8xf32>, vector<8x8x8xf32>, vector<8x8x8xf32> -> vector<8x8x8xf32>
    %cst_80 = arith.constant -1.000000e+30 : f32
    "tpu.trace_stop"() : () -> ()
    %249 = vector.shape_cast %6 : vector<1x8x8xi1> to vector<1x8x8xi1>
    %250 = vector.broadcast %249 : vector<1x8x8xi1> to vector<8x8x8xi1>
    %251 = vector.broadcast %cst_80 : f32 to vector<8x8x8xf32>
    %252 = arith.select %250, %248, %251 : vector<8x8x8xi1>, vector<8x8x8xf32>
    %cst_81 = arith.constant dense<0xFF800000> : vector<8x8xf32>
    %253 = vector.multi_reduction <maximumf>, %252, %cst_81 [2] : vector<8x8x8xf32> to vector<8x8xf32>
    %254 = vector.shape_cast %253 : vector<8x8xf32> to vector<8x8x1xf32>
    %255 = vector.broadcast %254 : vector<8x8x1xf32> to vector<8x8x8xf32>
    %256 = arith.subf %252, %255 : vector<8x8x8xf32>
    %257 = math.exp %256 : vector<8x8x8xf32>
    %cst_82 = arith.constant dense<0.000000e+00> : vector<8x8xf32>
    %258 = vector.multi_reduction <add>, %257, %cst_82 [2] : vector<8x8x8xf32> to vector<8x8xf32>
    %259 = vector.shape_cast %258 : vector<8x8xf32> to vector<8x8x1xf32>
    %260 = vector.broadcast %259 : vector<8x8x1xf32> to vector<8x8x8xf32>
    %261 = arith.divf %257, %260 : vector<8x8x8xf32>
    "tpu.trace_start"() <{level = 10 : i32, message = "bqk,bkd->bqd"}> : () -> ()
    %cst_83 = arith.constant dense<0.000000e+00> : vector<8x8x8xf32>
    %262 = tpu.matmul %261, %247, %cst_83 {dimension_numbers = #tpu.dot_dimension_numbers<[2], [1], [1], [2], [0, 0, 0, 1, 1, 2], [0], [0]>} : vector<8x8x8xf32>, vector<8x8x8xf32>, vector<8x8x8xf32> -> vector<8x8x8xf32>
    "tpu.trace_stop"() : () -> ()
    %263 = vector.extract_strided_slice %262 {offsets = [0, 0, 0], sizes = [2, 8, 8], strides = [1, 1, 1]} : vector<8x8x8xf32> to vector<2x8x8xf32>
    %264 = vector.shape_cast %263 : vector<2x8x8xf32> to vector<16x8xf32>
    %265 = vector.extract_strided_slice %262 {offsets = [2, 0, 0], sizes = [2, 8, 8], strides = [1, 1, 1]} : vector<8x8x8xf32> to vector<2x8x8xf32>
    %266 = vector.shape_cast %265 : vector<2x8x8xf32> to vector<16x8xf32>
    %267 = vector.extract_strided_slice %262 {offsets = [4, 0, 0], sizes = [2, 8, 8], strides = [1, 1, 1]} : vector<8x8x8xf32> to vector<2x8x8xf32>
    %268 = vector.shape_cast %267 : vector<2x8x8xf32> to vector<16x8xf32>
    %269 = vector.extract_strided_slice %262 {offsets = [6, 0, 0], sizes = [2, 8, 8], strides = [1, 1, 1]} : vector<8x8x8xf32> to vector<2x8x8xf32>
    %270 = vector.shape_cast %269 : vector<2x8x8xf32> to vector<16x8xf32>
    %271 = tpu.concatenate %264, %266, %268, %270 in 1 : vector<16x8xf32>, vector<16x8xf32>, vector<16x8xf32>, vector<16x8xf32> -> vector<16x32xf32>
    %c1_84 = arith.constant 1 : index
    %c0_85 = arith.constant 0 : index
    %c0_86 = arith.constant 0 : index
    %272 = vector.load %arg7[%c1_84, %c0_85, %c0_86] : memref<2x32x32xf32, #tpu.memory_space<vmem>>, vector<1x32x32xf32>
    %273 = vector.shape_cast %272 : vector<1x32x32xf32> to vector<32x32xf32>
    %cst_87 = arith.constant dense<0.000000e+00> : vector<16x32xf32>
    %274 = tpu.matmul %271, %273, %cst_87 {dimension_numbers = #tpu.dot_dimension_numbers<[1], [0], [0], [1], [0, 0, 1, 1], [], []>} : vector<16x32xf32>, vector<32x32xf32>, vector<16x32xf32> -> vector<16x32xf32>
    %c1_88 = arith.constant 1 : index
    %c0_89 = arith.constant 0 : index
    %c0_90 = arith.constant 0 : index
    %275 = vector.load %arg8[%c1_88, %c0_89, %c0_90] : memref<2x1x32xf32, #tpu.memory_space<vmem>>, vector<1x1x32xf32>
    %276 = vector.shape_cast %275 : vector<1x1x32xf32> to vector<1x32xf32>
    %277 = vector.broadcast %276 : vector<1x32xf32> to vector<16x32xf32>
    %278 = arith.addf %274, %277 : vector<16x32xf32>
    %279 = arith.addf %166, %278 : vector<16x32xf32>
    %c1_91 = arith.constant 1 : index
    %c0_92 = arith.constant 0 : index
    %c0_93 = arith.constant 0 : index
    %280 = vector.load %arg9[%c1_91, %c0_92, %c0_93] : memref<2x1x32xf32, #tpu.memory_space<vmem>>, vector<1x1x32xf32>
    %281 = vector.shape_cast %280 : vector<1x1x32xf32> to vector<1x32xf32>
    %c1_94 = arith.constant 1 : index
    %c0_95 = arith.constant 0 : index
    %c0_96 = arith.constant 0 : index
    %282 = vector.load %arg10[%c1_94, %c0_95, %c0_96] : memref<2x1x32xf32, #tpu.memory_space<vmem>>, vector<1x1x32xf32>
    %283 = vector.shape_cast %282 : vector<1x1x32xf32> to vector<1x32xf32>
    %cst_97 = arith.constant dense<0.000000e+00> : vector<16xf32>
    %284 = vector.multi_reduction <add>, %279, %cst_97 [1] : vector<16x32xf32> to vector<16xf32>
    %285 = vector.shape_cast %284 : vector<16xf32> to vector<16x1xf32>
    %cst_98 = arith.constant 3.200000e+01 : f32
    %286 = vector.broadcast %cst_98 : f32 to vector<16x1xf32>
    %287 = arith.divf %285, %286 : vector<16x1xf32>
    %288 = vector.broadcast %287 : vector<16x1xf32> to vector<16x32xf32>
    %289 = arith.subf %279, %288 : vector<16x32xf32>
    %290 = arith.mulf %289, %289 : vector<16x32xf32>
    %cst_99 = arith.constant dense<0.000000e+00> : vector<16xf32>
    %291 = vector.multi_reduction <add>, %290, %cst_99 [1] : vector<16x32xf32> to vector<16xf32>
    %292 = vector.shape_cast %291 : vector<16xf32> to vector<16x1xf32>
    %cst_100 = arith.constant 3.200000e+01 : f32
    %293 = vector.broadcast %cst_100 : f32 to vector<16x1xf32>
    %294 = arith.divf %292, %293 : vector<16x1xf32>
    %295 = vector.broadcast %287 : vector<16x1xf32> to vector<16x32xf32>
    %296 = arith.subf %279, %295 : vector<16x32xf32>
    %cst_101 = arith.constant 9.99999974E-6 : f32
    %297 = vector.broadcast %cst_101 : f32 to vector<16x1xf32>
    %298 = arith.addf %294, %297 : vector<16x1xf32>
    %299 = math.rsqrt %298 : vector<16x1xf32>
    %300 = vector.broadcast %299 : vector<16x1xf32> to vector<16x32xf32>
    %301 = arith.mulf %296, %300 : vector<16x32xf32>
    %302 = vector.broadcast %281 : vector<1x32xf32> to vector<16x32xf32>
    %303 = arith.mulf %302, %301 : vector<16x32xf32>
    %304 = vector.broadcast %283 : vector<1x32xf32> to vector<16x32xf32>
    %305 = arith.addf %303, %304 : vector<16x32xf32>
    %c1_102 = arith.constant 1 : index
    %c0_103 = arith.constant 0 : index
    %c0_104 = arith.constant 0 : index
    %306 = vector.load %arg11[%c1_102, %c0_103, %c0_104] : memref<2x32x128xf32, #tpu.memory_space<vmem>>, vector<1x32x128xf32>
    %307 = vector.shape_cast %306 : vector<1x32x128xf32> to vector<32x128xf32>
    %cst_105 = arith.constant dense<0.000000e+00> : vector<16x128xf32>
    %308 = tpu.matmul %305, %307, %cst_105 {dimension_numbers = #tpu.dot_dimension_numbers<[1], [0], [0], [1], [0, 0, 1, 1], [], []>} : vector<16x32xf32>, vector<32x128xf32>, vector<16x128xf32> -> vector<16x128xf32>
    %c1_106 = arith.constant 1 : index
    %c0_107 = arith.constant 0 : index
    %c0_108 = arith.constant 0 : index
    %309 = vector.load %arg12[%c1_106, %c0_107, %c0_108] : memref<2x1x128xf32, #tpu.memory_space<vmem>>, vector<1x1x128xf32>
    %310 = vector.shape_cast %309 : vector<1x1x128xf32> to vector<1x128xf32>
    %311 = vector.broadcast %310 : vector<1x128xf32> to vector<16x128xf32>
    %312 = arith.addf %308, %311 : vector<16x128xf32>
    %313 = arith.negf %312 : vector<16x128xf32>
    %314 = math.exp %313 : vector<16x128xf32>
    %cst_109 = arith.constant 1.000000e+00 : f32
    %315 = vector.broadcast %cst_109 : f32 to vector<16x128xf32>
    %316 = arith.addf %315, %314 : vector<16x128xf32>
    %317 = arith.divf %315, %316 : vector<16x128xf32>
    %318 = arith.mulf %312, %317 : vector<16x128xf32>
    %c1_110 = arith.constant 1 : index
    %c0_111 = arith.constant 0 : index
    %c0_112 = arith.constant 0 : index
    %319 = vector.load %arg13[%c1_110, %c0_111, %c0_112] : memref<2x128x32xf32, #tpu.memory_space<vmem>>, vector<1x128x32xf32>
    %320 = vector.shape_cast %319 : vector<1x128x32xf32> to vector<128x32xf32>
    %cst_113 = arith.constant dense<0.000000e+00> : vector<16x32xf32>
    %321 = tpu.matmul %318, %320, %cst_113 {dimension_numbers = #tpu.dot_dimension_numbers<[1], [0], [0], [1], [0, 0, 1, 1], [], []>} : vector<16x128xf32>, vector<128x32xf32>, vector<16x32xf32> -> vector<16x32xf32>
    %c1_114 = arith.constant 1 : index
    %c0_115 = arith.constant 0 : index
    %c0_116 = arith.constant 0 : index
    %322 = vector.load %arg14[%c1_114, %c0_115, %c0_116] : memref<2x1x32xf32, #tpu.memory_space<vmem>>, vector<1x1x32xf32>
    %323 = vector.shape_cast %322 : vector<1x1x32xf32> to vector<1x32xf32>
    %324 = vector.broadcast %323 : vector<1x32xf32> to vector<16x32xf32>
    %325 = arith.addf %321, %324 : vector<16x32xf32>
    %326 = arith.addf %279, %325 : vector<16x32xf32>
    %c0_117 = arith.constant 0 : index
    %c0_118 = arith.constant 0 : index
    %327 = vector.load %arg15[%c0_117, %c0_118] : memref<1x32xf32, #tpu.memory_space<vmem>>, vector<1x32xf32>
    %c0_119 = arith.constant 0 : index
    %c0_120 = arith.constant 0 : index
    %328 = vector.load %arg16[%c0_119, %c0_120] : memref<1x32xf32, #tpu.memory_space<vmem>>, vector<1x32xf32>
    %cst_121 = arith.constant dense<0.000000e+00> : vector<16xf32>
    %329 = vector.multi_reduction <add>, %326, %cst_121 [1] : vector<16x32xf32> to vector<16xf32>
    %330 = vector.shape_cast %329 : vector<16xf32> to vector<16x1xf32>
    %cst_122 = arith.constant 3.200000e+01 : f32
    %331 = vector.broadcast %cst_122 : f32 to vector<16x1xf32>
    %332 = arith.divf %330, %331 : vector<16x1xf32>
    %333 = vector.broadcast %332 : vector<16x1xf32> to vector<16x32xf32>
    %334 = arith.subf %326, %333 : vector<16x32xf32>
    %335 = arith.mulf %334, %334 : vector<16x32xf32>
    %cst_123 = arith.constant dense<0.000000e+00> : vector<16xf32>
    %336 = vector.multi_reduction <add>, %335, %cst_123 [1] : vector<16x32xf32> to vector<16xf32>
    %337 = vector.shape_cast %336 : vector<16xf32> to vector<16x1xf32>
    %cst_124 = arith.constant 3.200000e+01 : f32
    %338 = vector.broadcast %cst_124 : f32 to vector<16x1xf32>
    %339 = arith.divf %337, %338 : vector<16x1xf32>
    %340 = vector.broadcast %332 : vector<16x1xf32> to vector<16x32xf32>
    %341 = arith.subf %326, %340 : vector<16x32xf32>
    %cst_125 = arith.constant 9.99999974E-6 : f32
    %342 = vector.broadcast %cst_125 : f32 to vector<16x1xf32>
    %343 = arith.addf %339, %342 : vector<16x1xf32>
    %344 = math.rsqrt %343 : vector<16x1xf32>
    %345 = vector.broadcast %344 : vector<16x1xf32> to vector<16x32xf32>
    %346 = arith.mulf %341, %345 : vector<16x32xf32>
    %347 = vector.broadcast %327 : vector<1x32xf32> to vector<16x32xf32>
    %348 = arith.mulf %347, %346 : vector<16x32xf32>
    %349 = vector.broadcast %328 : vector<1x32xf32> to vector<16x32xf32>
    %350 = arith.addf %348, %349 : vector<16x32xf32>
    %c0_126 = arith.constant 0 : index
    %c0_127 = arith.constant 0 : index
    %351 = vector.load %arg17[%c0_126, %c0_127] : memref<32x256xf32, #tpu.memory_space<vmem>>, vector<32x256xf32>
    %cst_128 = arith.constant dense<0.000000e+00> : vector<16x256xf32>
    %352 = tpu.matmul %350, %351, %cst_128 {dimension_numbers = #tpu.dot_dimension_numbers<[1], [0], [0], [1], [0, 0, 1, 1], [], []>} : vector<16x32xf32>, vector<32x256xf32>, vector<16x256xf32> -> vector<16x256xf32>
    %c0_129 = arith.constant 0 : index
    %c0_130 = arith.constant 0 : index
    %353 = vector.load %arg18[%c0_129, %c0_130] : memref<16x256xf32, #tpu.memory_space<vmem>>, vector<16x256xf32>
    tpu.vector_store %arg18[%c0_129, %c0_130], %352 {strides = array<i32>} : memref<16x256xf32, #tpu.memory_space<vmem>>, vector<16x256xf32>,
    return
  }
}

</mosaic_0001>

<bundles_post_ra>
// kernel: gpt1_forward.1
= control target key start
LH: loop header
LB: loop body
LE: loop exit
PB: predicated region body
PF: predicated region fallthrough
CT: control target
= control target key end

     0   :  { %s3746_s0 = inlined_call_operand.vmem [shape: f32[16,32], index: 0, kind: input, shape index: {}]   ;;  %s3747_s1 = inlined_call_operand.vmem [shape: f32[16,16], index: 1, kind: input, shape index: {}]   ;;  %s3748_s2 = inlined_call_operand.vmem [shape: f32[16,16], index: 2, kind: input, shape index: {}]   ;;  %s3749_s3 = inlined_call_operand.vmem [shape: f32[2,1,32], index: 3, kind: input, shape index: {}]   ;;  %s3750_s4 = inlined_call_operand.vmem [shape: f32[2,1,32], index: 4, kind: input, shape index: {}]   ;;  %s3751_s5 = inlined_call_operand.vmem [shape: f32[2,32,96], index: 5, kind: input, shape index: {}]   ;;  %s3752_s6 = inlined_call_operand.vmem [shape: f32[2,1,96], index: 6, kind: input, shape index: {}]   ;;  %s3753_s7 = inlined_call_operand.vmem [shape: f32[2,32,32], index: 7, kind: input, shape index: {}]   ;;  %s3754_s8 = inlined_call_operand.vmem [shape: f32[2,1,32], index: 8, kind: input, shape index: {}]   ;;  %s3755_s9 = inlined_call_operand.vmem [shape: f32[2,1,32], index: 9, kind: input, shape index: {}]   ;;  %s3756_s10 = inlined_call_operand.vmem [shape: f32[2,1,32], index: 10, kind: input, shape index: {}]   ;;  %s3757_s11 = inlined_call_operand.vmem [shape: f32[2,32,128], index: 11, kind: input, shape index: {}]   ;;  %s3758_s12 = inlined_call_operand.vmem [shape: f32[2,1,128], index: 12, kind: input, shape index: {}]   ;;  %s3759_s13 = inlined_call_operand.vmem [shape: f32[2,128,32], index: 13, kind: input, shape index: {}]   ;;  %s3760_s14 = inlined_call_operand.vmem [shape: f32[2,1,32], index: 14, kind: input, shape index: {}]   ;;  %s3761_s15 = inlined_call_operand.vmem [shape: f32[1,32], index: 15, kind: input, shape index: {}]   ;;  %s3762_s16 = inlined_call_operand.vmem [shape: f32[1,32], index: 16, kind: input, shape index: {}]   ;;  %s3763_s17 = inlined_call_operand.vmem [shape: f32[32,256], index: 17, kind: input, shape index: {}]   ;;  %s3764_s18 = inlined_call_operand.hbm [shape: f32[16,256], index: 18, kind: output, shape index: {}]  }
   0x1   :  { %3778 = sst [smem:[#allocation5_spill]] %s3746_s0 }
   0x2   :  { %3779 = sst [smem:[#allocation6_spill]] %s3747_s1 }
   0x3   :  { %3780 = sst [smem:[#allocation7_spill]] %s3748_s2 }
   0x4   :  { %s3781_s29 = sld [smem:[#allocation5_spill]]  ;;  %vm73_vm0 = vcmask 261120  }
   0xa   :  { %v60_v0 = vld [vmem:[%s3781_s29] sm:$0xff]  ;;  %v61_v2 = vld [vmem:[%s3781_s29 + $0x8] sm:$0xff] }
   0xb   :  { %v74_v1 = vsel %vm73_vm0, %v60_v0, 0.0  ;;  %v77_v3 = vsel %vm73_vm0, %v61_v2, 0.0 }
   0xc   :  { %75 = vadd.xlane.f32.xlu0 %v74_v1 }
   0xd   :  { %23 = vsyncpa [#allocation3], 0  ;;  %v2779_v4 = vmov 32.0   ;;  %v138_v21 = vld [vmem:[%s3751_s5 + $0x18] sm:$0xff]  ;;  %v137_v22 = vld [vmem:[%s3751_s5 + $0x10] sm:$0xff]  ;;  %s3782_s25 = sld [smem:[#allocation6_spill]] }
   0xe   :  { %2645 = vrcp.f32 %v2779_v4  ;;  %161 = vmatpush.msra.mxu0 %v138_v21  ;;  %v136_v23 = vld [vmem:[%s3751_s5 + $0x8] sm:$0xff]  ;;  %s2780_s26 = smov 48   ;;  %v135_v25 = vld [vmem:[%s3751_s5] sm:$0xff]  ;;  %s3783_s19 = sld [smem:[#allocation7_spill]]  ;;  %vm224_vm8 = vcmask 130048   ;;  %vm353_vm9 = vcmask 64512  }
   0xf   :  { %s2781_s1 = smov 16   ;;  %s2782_s23 = smov 32   ;;  %v2627_v43 = vld [vmem:[%s3749_s3] ss:$0 sm:$0xff] }
  0x10   :  { %162 = vmatpush.msra.mxu0 %v137_v22  ;;  %v2628_v47 = vld [vmem:[%s3750_s4] ss:$0 sm:$0xff]  ;;  %s2783_s20 = smov 112   ;;  %s2784_s21 = smov 96  }
  0x11   :  { %v2629_v62 = vld [vmem:[%s3752_s6] ss:$0 sm:$0xff]  ;;  %s3774_s22 = smov 120   ;;  %s3772_s2 = smov 104  }
  0x12   :  { %163 = vmatpush.msra.mxu0 %v136_v23  ;;  %s3768_s24 = smov 8  }
  0x13   :  { %v2917_v24 = vld [vmem:[%s3782_s25] sm:$0xff]  ;;  %v2935_v30 = vld [vmem:[%s3782_s25 + $0x8] sm:$0xff] }
  0x14   :  { %78 = vadd.xlane.f32.xlu0 %v77_v3  ;;  %v2646_v5 = vpop.eup %2645  ;;  %235 = vrot.lane.b32.xlu2 %v2917_v24, %s2780_s26  ;;  %v2926_v26 = vld [vmem:[%s3783_s19] sm:$0xff]  ;;  %v2941_v31 = vld [vmem:[%s3783_s19 + $0x8] sm:$0xff] }
  0x15   :  { %v81_v6 = vmul.f32 32.0, %v2646_v5  ;;  %vm85_vm1 = vweird.f32 %v2646_v5  ;;  %164 = vmatpush.msra.mxu0 %v135_v25 }
  0x17   :  { %v82_v7 = vsub.f32 1.0, %v81_v6 }
  0x19   :  { %v83_v8 = vmul.f32 %v2646_v5, %v82_v7 }
  0x1b   :  { %v84_v9 = vadd.f32 %v2646_v5, %v83_v8 }
  0x1c   :  { %261 = vrot.lane.b32.xlu2 %v2926_v26, %s2780_s26 }
  0x1d   :  { %v2895_v10 = vsel %vm85_vm1, %v2646_v5, %v84_v9 }
  0x24   :  { %263 = vrot.lane.b32.xlu2 %v2941_v31, %s2780_s26 }
  0x28   :  { %198 = vrot.lane.b32.xlu0 %v2926_v26, %s2781_s1 }
  0x2c   :  { %200 = vrot.lane.b32.xlu2 %v2941_v31, %s2781_s1 }
  0x30   :  { %253 = vrot.lane.b32.xlu0 %v2917_v24, %s2782_s23 }
  0x34   :  { %227 = vrot.lane.b32.xlu2 %v2926_v26, %s2782_s23 }
  0x38   :  { %255 = vrot.lane.b32.xlu0 %v2935_v30, %s2782_s23 }
  0x3c   :  { %176 = vrot.lane.b32.xlu2 %v2917_v24, %s2781_s1 }
  0x44   :  { %178 = vrot.lane.b32.xlu2 %v2935_v30, %s2781_s1 }
  0x6e   :  { %v2964_v57 = vpop.permute.xlu2 %235 }
  0x76   :  { %v2966_v58 = vpop.permute.xlu2 %261 }
  0x7e   :  { %v2968_v59 = vpop.permute.xlu2 %263 }
  0x7f   :  { %v76_v11 = vpop.xlane.xlu0 %75 }
  0x80   :  { %v87_v12 = vmul.f32 %v2895_v10, %v76_v11 }
  0x82   :  { %v89_v13 = vsub.f32 %v60_v0, %v87_v12 }
  0x84   :  { %v91_v14 = vmul.f32 %v89_v13, %v89_v13 }
  0x86   :  { %v93_v15 = vsel %vm73_vm0, %v91_v14, 0.0  ;;  %v2970_v60 = vpop.permute.xlu2 %200 }
  0x87   :  { %94 = vadd.xlane.f32.xlu1 %v93_v15  ;;  %v79_v16 = vpop.xlane.xlu0 %78 }
  0x88   :  { %v88_v17 = vmul.f32 %v2895_v10, %v79_v16 }
  0x8a   :  { %v2900_v18 = vsub.f32 %v61_v2, %v88_v17 }
  0x8c   :  { %v92_v19 = vmul.f32 %v2900_v18, %v2900_v18 }
  0x8e   :  { %v96_v20 = vsel %vm73_vm0, %v92_v19, 0.0  ;;  %v2972_v61 = vpop.permute.xlu2 %227 }
  0x8f   :  { %97 = vadd.xlane.f32.xlu1 %v96_v20 }
  0x96   :  { %v2989_v5 = vpop.permute.xlu2 %176 }
  0x9a   :  { %v2979_v1 = vpop.permute.xlu0 %198 }
  0xa2   :  { %v3016_v19 = vpop.permute.xlu0 %253 }
  0xa8   :  { %237 = vrot.lane.b32.xlu1 %v2935_v30, %s2780_s26  ;;  %s3776_s26 = smov 24  }
  0xaa   :  { %v3020_v21 = vpop.permute.xlu0 %255 }
  0xb0   :  { %229 = vrot.lane.b32.xlu1 %v2941_v31, %s2782_s23  ;;  %s3770_s23 = smov 64  }
  0xfa   :  { %v95_v27 = vpop.xlane.xlu1 %94 }
  0xfb   :  { %v99_v28 = vmul.f32 %v95_v27, %v2895_v10 }
  0xfd   :  { %v101_v29 = vadd.f32 1e-05, %v99_v28 }
  0xff   :  { %2647 = vrsqrt.f32 %v101_v29  ;;  %vm109_vm3 = vweird.f32 %v101_v29 }
 0x102   :  { %v98_v32 = vpop.xlane.xlu1 %97 }
 0x103   :  { %v100_v33 = vmul.f32 %v98_v32, %v2895_v10 }
 0x105   :  { %v2648_v34 = vpop.eup %2647  ;;  %v102_v35 = vadd.f32 1e-05, %v100_v33 }
 0x106   :  { %v104_v36 = vmul.f32 %v2648_v34, %v101_v29  ;;  %vm110_vm2 = vweird.f32 %v2648_v34 }
 0x107   :  { %2649 = vrsqrt.f32 %v102_v35  ;;  %vm111_vm4 = vmor %vm109_vm3, %vm110_vm2  ;;  %vm119_vm6 = vweird.f32 %v102_v35 }
 0x108   :  { %v105_v37 = vmul.f32 %v2648_v34, %v104_v36 }
 0x10a   :  { %v106_v38 = vmul.f32 0.5, %v105_v37 }
 0x10c   :  { %v107_v39 = vsub.f32 1.5, %v106_v38 }
 0x10d   :  { %v2650_v40 = vpop.eup %2649 }
 0x10e   :  { %v108_v41 = vmul.f32 %v2648_v34, %v107_v39  ;;  %v114_v42 = vmul.f32 %v2650_v40, %v102_v35  ;;  %vm120_vm5 = vweird.f32 %v2650_v40 }
 0x10f   :  { %vm121_vm7 = vmor %vm119_vm6, %vm120_vm5 }
 0x110   :  { %v112_v44 = vsel %vm111_vm4, %v2648_v34, %v108_v41  ;;  %v115_v45 = vmul.f32 %v2650_v40, %v114_v42 }
 0x111   :  { %v123_v46 = vmul.f32 %v112_v44, %v89_v13  ;;  %v3005_v13 = vpop.permute.xlu2 %178 }
 0x112   :  { %v116_v48 = vmul.f32 0.5, %v115_v45 }
 0x113   :  { %v128_v49 = vmul.f32 %v2627_v43, %v123_v46 }
 0x114   :  { %v117_v50 = vsub.f32 1.5, %v116_v48 }
 0x115   :  { %v133_v51 = vadd.f32 %v2628_v47, %v128_v49 }
 0x116   :  { %v118_v52 = vmul.f32 %v2650_v40, %v117_v50 }
 0x117   :  { %2450 = vmatmul.msk.f32.vlgmr.msra.gmra.mxu0 %vm73_vm0, %v133_v51 }
 0x118   :  { %v122_v53 = vsel %vm121_vm7, %v2650_v40, %v118_v52 }
 0x119   :  { %v124_v54 = vmul.f32 %v122_v53, %v2900_v18 }
 0x11a   :  { %v2994_v8 = vpop.permute.xlu1 %237 }
 0x11b   :  { %v129_v55 = vmul.f32 %v2627_v43, %v124_v54 }
 0x11d   :  { %v134_v56 = vadd.f32 %v2628_v47, %v129_v55 }
 0x11f   :  { %2451 = vmatmul.msk.f32.gmra.mxu0 %vm73_vm0, %v134_v56 }
 0x122   :  { %v3018_v20 = vpop.permute.xlu1 %229 }
 0x194   :  { %v166_v63 = vpop.f32.mrf.mxu0 }
 0x195   :  { %v2977_v0 = vadd.f32 %v2629_v62, %v166_v63 }
 0x197   :  { %v267_v2 = vmul.f32 %v2966_v58, %v2977_v0  ;;  %v241_v3 = vmul.f32 %v2964_v57, %v2977_v0  ;;  %v204_v4 = vmul.f32 %v2979_v1, %v2977_v0  ;;  %v182_v15 = vmul.f32 %v2989_v5, %v2977_v0 }
 0x198   :  { %v194_v16 = vmul.f32 %v2977_v0, %v2917_v24  ;;  %v259_v22 = vmul.f32 %v3016_v19, %v2977_v0  ;;  %v233_v23 = vmul.f32 %v2972_v61, %v2977_v0  ;;  %v172_v41 = vmul.f32 %v2977_v0, %v2926_v26 }
 0x199   :  { %271 = vrot.lane.b32.xlu0 %v267_v2, %s2783_s20  ;;  %245 = vrot.lane.b32.xlu1 %v241_v3, %s2783_s20 }
 0x19a   :  { %208 = vrot.lane.b32.xlu2 %v204_v4, %s2783_s20 }
 0x19c   :  { %v169_v6 = vpop.f32.mrf.mxu0 }
 0x19d   :  { %v2992_v7 = vadd.f32 %v2629_v62, %v169_v6 }
 0x19f   :  { %v268_v9 = vmul.f32 %v2968_v59, %v2992_v7  ;;  %v242_v11 = vmul.f32 %v2994_v8, %v2992_v7  ;;  %v205_v12 = vmul.f32 %v2970_v60, %v2992_v7  ;;  %v183_v14 = vmul.f32 %v3005_v13, %v2992_v7 }
 0x1a0   :  { %v260_v32 = vmul.f32 %v3020_v21, %v2992_v7  ;;  %v195_v33 = vmul.f32 %v2992_v7, %v2935_v30  ;;  %v234_v34 = vmul.f32 %v3018_v20, %v2992_v7  ;;  %v173_v48 = vmul.f32 %v2992_v7, %v2941_v31 }
 0x1a1   :  { %273 = vrot.lane.b32.xlu0 %v268_v9, %s2783_s20  ;;  %247 = vrot.lane.b32.xlu1 %v242_v11, %s2783_s20  ;;  %v2577_v31 = vpack.i.bf16 %v2992_v7, %v2977_v0  ;;  %v66_v9 = vlaneseq }
 0x1a2   :  { %210 = vrot.lane.b32.xlu2 %v205_v12, %s2783_s20 }
 0x1a9   :  { %188 = vrot.lane.b32.xlu0 %v183_v14, %s2783_s20  ;;  %186 = vrot.lane.b32.xlu1 %v182_v15, %s2783_s20  ;;  %v67_v14 = vshrl.u32 %v66_v9, 7  ;;  %v69_v15 = vand.u32 127, %v66_v9 }
 0x1ab   :  { %vm3073_vm10 = vcmp.le.s32.totalorder %v69_v15, %v67_v14 }
 0x1f4   :  { %v209_v17 = vpop.permute.xlu2 %208 }
 0x1f5   :  { %v214_v18 = vsub.f32 %v194_v16, %v209_v17 }
 0x1f7   :  { %218 = vrot.lane.b32.xlu1 %v214_v18, %s2781_s1 }
 0x1fc   :  { %v211_v29 = vpop.permute.xlu2 %210 }
 0x1fd   :  { %v215_v36 = vsub.f32 %v195_v33, %v211_v29 }
 0x20b   :  { %v246_v25 = vpop.permute.xlu1 %245  ;;  %v272_v27 = vpop.permute.xlu0 %271 }
 0x20c   :  { %v251_v28 = vsub.f32 %v233_v23, %v246_v25  ;;  %v277_v24 = vsub.f32 %v259_v22, %v272_v27 }
 0x20e   :  { %281 = vrot.lane.b32.xlu0 %v251_v28, %s2784_s21  ;;  %289 = vrot.lane.b32.xlu2 %v277_v24, %s2783_s20 }
 0x213   :  { %v274_v35 = vpop.permute.xlu0 %273  ;;  %v248_v37 = vpop.permute.xlu1 %247 }
 0x214   :  { %v278_v38 = vsub.f32 %v260_v32, %v274_v35  ;;  %v252_v39 = vsub.f32 %v234_v34, %v248_v37 }
 0x216   :  { %220 = vrot.lane.b32.xlu0 %v215_v36, %s2781_s1  ;;  %291 = vrot.lane.b32.xlu1 %v278_v38, %s2783_s20 }
 0x217   :  { %283 = vrot.lane.b32.xlu2 %v252_v39, %s2784_s21 }
 0x21b   :  { %v187_v40 = vpop.permute.xlu1 %186  ;;  %v189_v44 = vpop.permute.xlu0 %188 }
 0x21c   :  { %v192_v30 = vsub.f32 %v172_v41, %v187_v40  ;;  %v193_v49 = vsub.f32 %v173_v48, %v189_v44 }
 0x268   :  { %v290_v45 = vpop.permute.xlu2 %289 }
 0x269   :  { %v219_v42 = vpop.permute.xlu1 %218 }
 0x26a   :  { %v225_v43 = vsel %vm224_vm8, %v192_v30, %v219_v42 }
 0x26b   :  { %299 = vrot.lane.b32.xlu1 %v225_v43, %s3774_s22  ;;  %v317_v26 = vmul.f32 0.35355338, %v225_v43 }
 0x271   :  { %v284_v50 = vpop.permute.xlu2 %283 }
 0x280   :  { %v282_v46 = vpop.permute.xlu0 %281 }
 0x281   :  { %v295_v47 = vsel %vm224_vm8, %v282_v46, %v290_v45 }
 0x282   :  { %331 = vrot.lane.b32.xlu0 %v295_v47, %s2783_s20  ;;  %327 = vrot.lane.b32.xlu2 %v295_v47, %s3774_s22 }
 0x283   :  { %2452 = vmatpush.xpose.msk.msra.mxu1 %vm353_vm9, %v295_v47 }
 0x286   :  { %2453 = vmatmul.msk.f32.vlgmr.msra.gmra.mxu1 %vm353_vm9, %v317_v26 }
 0x288   :  { %v292_v51 = vpop.permute.xlu1 %291  ;;  %v221_v52 = vpop.permute.xlu0 %220 }
 0x289   :  { %v296_v53 = vsel %vm224_vm8, %v284_v50, %v292_v51  ;;  %v226_v54 = vsel %vm224_vm8, %v193_v49, %v221_v52 }
 0x28a   :  { %329 = vrot.lane.b32.xlu1 %v296_v53, %s3774_s22  ;;  %2454 = vmatpush.xpose.msk.msra.mxu2 %vm353_vm9, %v296_v53  ;;  %v318_v55 = vmul.f32 0.35355338, %v226_v54 }
 0x28b   :  { %305 = vrot.lane.b32.xlu2 %v225_v43, %s2783_s20  ;;  %301 = vrot.lane.b32.xlu0 %v226_v54, %s3774_s22 }
 0x28d   :  { %2455 = vmatmul.msk.f32.vlgmr.msra.gmra.mxu2 %vm353_vm9, %v318_v55 }
 0x292   :  { %313 = vrot.lane.b32.xlu1 %v226_v54, %s3772_s2 }
 0x293   :  { %337 = vrot.lane.b32.xlu2 %v296_v53, %s3772_s2  ;;  %335 = vrot.lane.b32.xlu0 %v295_v47, %s3772_s2 }
 0x29a   :  { %333 = vrot.lane.b32.xlu1 %v296_v53, %s2783_s20 }
 0x29b   :  { %311 = vrot.lane.b32.xlu2 %v225_v43, %s3772_s2  ;;  %307 = vrot.lane.b32.xlu0 %v226_v54, %s2783_s20 }
 0x2a2   :  { %2578 = vrot.lane.b32.xlu1 %v2577_v31, %s3772_s2  ;;  %s3787_s2 = smov 104  }
 0x2a3   :  { %2573 = vrot.lane.b32.xlu2 %v2577_v31, %s2783_s20  ;;  %2568 = vrot.lane.b32.xlu0 %v2577_v31, %s3774_s22 }
 0x2dc   :  { %v328_v56 = vpop.permute.xlu2 %327 }
 0x2dd   :  { %v300_v62 = vpop.permute.xlu1 %299  ;;  %2456 = vmatpush.xpose.msk.msra.mxu3 %vm353_vm9, %v328_v56 }
 0x2de   :  { %v319_v63 = vmul.f32 0.35355338, %v300_v62 }
 0x2e0   :  { %2457 = vmatmul.msk.f32.vlgmr.msra.gmra.mxu3 %vm353_vm9, %v319_v63 }
 0x2e5   :  { %v306_v2 = vpop.permute.xlu2 %305 }
 0x2e6   :  { %v321_v6 = vmul.f32 0.35355338, %v306_v2 }
 0x2ed   :  { %v338_v4 = vpop.permute.xlu2 %337 }
 0x2f4   :  { %v332_v3 = vpop.permute.xlu0 %331 }
 0x2f5   :  { %2460 = vmatpush.xpose.msk.msrb.mxu2 %vm353_vm9, %v332_v3  ;;  %v312_v22 = vpop.permute.xlu2 %311 }
 0x2f6   :  { %v323_v29 = vmul.f32 0.35355338, %v312_v22 }
 0x2f8   :  { %2461 = vmatmul.msk.f32.vlgmr.msrb.gmra.mxu2 %vm353_vm9, %v321_v6 }
 0x2f9   :  { %2466 = vmatpush.xpose.msk.msra.mxu2 %vm353_vm9, %v338_v4 }
 0x2fc   :  { %v330_v11 = vpop.permute.xlu1 %329 }
 0x2fd   :  { %v302_v12 = vpop.permute.xlu0 %301  ;;  %2458 = vmatpush.xpose.msk.msrb.mxu1 %vm353_vm9, %v330_v11  ;;  %v3091_v41 = vpop.permute.xlu2 %2573 }
 0x2fe   :  { %v320_v16 = vmul.f32 0.35355338, %v302_v12  ;;  %v2575_v9 = vunpack.i.l.bf16 %v3091_v41 }
 0x300   :  { %2459 = vmatmul.msk.f32.vlgmr.msrb.gmra.mxu1 %vm353_vm9, %v320_v16 }
 0x303   :  { %v376_v18 = vpop.f32.mrf.mxu1 }
 0x304   :  { %v556_v23 = vsel %vm3073_vm10, %v376_v18, -1e+30  ;;  %v314_v25 = vpop.permute.xlu1 %313 }
 0x305   :  { %v324_v27 = vmul.f32 0.35355338, %v314_v25  ;;  %v336_v28 = vpop.permute.xlu0 %335  ;;  %v564_v24 = vsel %vm353_vm9, %v556_v23, -inf }
 0x306   :  { %565 = vmax.xlane.f32.xlu2 %v564_v24  ;;  %2464 = vmatpush.xpose.msk.msra.mxu1 %vm353_vm9, %v336_v28 }
 0x307   :  { %2467 = vmatmul.msk.f32.vlgmr.msra.gmra.mxu2 %vm353_vm9, %v324_v27 }
 0x309   :  { %2465 = vmatmul.msk.f32.vlgmr.msra.gmra.mxu1 %vm353_vm9, %v323_v29 }
 0x30c   :  { %v334_v32 = vpop.permute.xlu1 %333 }
 0x30d   :  { %v308_v33 = vpop.permute.xlu0 %307  ;;  %2462 = vmatpush.xpose.msk.msrb.mxu3 %vm353_vm9, %v334_v32 }
 0x30e   :  { %v322_v34 = vmul.f32 0.35355338, %v308_v33 }
 0x310   :  { %v401_v35 = vpop.f32.mrf.mxu2  ;;  %2463 = vmatmul.msk.f32.vlgmr.msrb.gmra.mxu3 %vm353_vm9, %v322_v34 }
 0x311   :  { %v557_v36 = vsel %vm3073_vm10, %v401_v35, -1e+30 }
 0x312   :  { %v567_v37 = vsel %vm353_vm9, %v557_v36, -inf }
 0x313   :  { %568 = vmax.xlane.f32.xlu1 %v567_v37 }
 0x314   :  { %v3119_v12 = vpop.permute.xlu1 %2578 }
 0x315   :  { %v2569_v2 = vpop.permute.xlu0 %2568  ;;  %v2581_v37 = vunpack.i.h.bf16 %v3119_v12 }
 0x316   :  { %v2570_v3 = vunpack.i.l.bf16 %v2569_v2  ;;  %v2571_v6 = vunpack.i.h.bf16 %v2569_v2 }
 0x318   :  { %v2582_v4 = vpack.i.bf16 %v2570_v3, %v2977_v0  ;;  %v2587_v11 = vpack.i.bf16 %v2571_v6, %v2575_v9 }
 0x363   :  { %v426_v38 = vpop.f32.mrf.mxu3 }
 0x364   :  { %v558_v39 = vsel %vm3073_vm10, %v426_v38, -1e+30 }
 0x365   :  { %v570_v40 = vsel %vm353_vm9, %v558_v39, -inf }
 0x366   :  { %571 = vmax.xlane.f32.xlu1 %v570_v40 }
 0x379   :  { %v566_v42 = vpop.xlane.xlu2 %565 }
 0x37a   :  { %v588_v47 = vsub.f32 %v556_v23, %v566_v42 }
 0x37b   :  { %v476_v30 = vpop.f32.mrf.mxu2 }
 0x37c   :  { %v560_v43 = vsel %vm3073_vm10, %v476_v30, -1e+30  ;;  %v596_v48 = vmul.f32 1.442695, %v588_v47 }
 0x37d   :  { %v451_v44 = vpop.f32.mrf.mxu1  ;;  %v576_v45 = vsel %vm353_vm9, %v560_v43, -inf }
 0x37e   :  { %v559_v46 = vsel %vm3073_vm10, %v451_v44, -1e+30  ;;  %577 = vmax.xlane.f32.xlu0 %v576_v45  ;;  %2651 = vpow2.f32 %v596_v48 }
 0x37f   :  { %v573_v26 = vsel %vm353_vm9, %v559_v46, -inf }
 0x380   :  { %574 = vmax.xlane.f32.xlu2 %v573_v26 }
 0x384   :  { %v3108_v55 = vpop.eup %2651 }
 0x385   :  { %v612_v31 = vsel %vm353_vm9, %v3108_v55, 0.0 }
 0x386   :  { %v526_v49 = vpop.f32.mrf.mxu1  ;;  %v569_v14 = vpop.xlane.xlu1 %568 }
 0x387   :  { %v3101_v50 = vsel %vm3073_vm10, %v526_v49, -1e+30  ;;  %v589_v15 = vsub.f32 %v557_v36, %v569_v14 }
 0x388   :  { %v582_v51 = vsel %vm353_vm9, %v3101_v50, -inf }
 0x389   :  { %583 = vmax.xlane.f32.xlu0 %v582_v51  ;;  %v598_v16 = vmul.f32 1.442695, %v589_v15 }
 0x38a   :  { %v551_v52 = vpop.f32.mrf.mxu2 }
 0x38b   :  { %v563_v53 = vsel %vm3073_vm10, %v551_v52, -1e+30  ;;  %2653 = vpow2.f32 %v598_v16 }
 0x38c   :  { %v585_v54 = vsel %vm353_vm9, %v563_v53, -inf }
 0x38d   :  { %586 = vmax.xlane.f32.xlu2 %v585_v54 }
 0x391   :  { %613 = vadd.xlane.f32.xlu0 %v612_v31  ;;  %v3121_v18 = vpop.eup %2653 }
 0x392   :  { %v615_v0 = vsel %vm353_vm9, %v3121_v18, 0.0 }
 0x393   :  { %v501_v56 = vpop.f32.mrf.mxu3 }
 0x394   :  { %v561_v62 = vsel %vm3073_vm10, %v501_v56, -1e+30 }
 0x395   :  { %v579_v63 = vsel %vm353_vm9, %v561_v62, -inf }
 0x396   :  { %580 = vmax.xlane.f32.xlu1 %v579_v63 }
 0x3a5   :  { %2583 = vrot.lane.b32.xlu2 %v2582_v4, %s3770_s23 }
 0x3af   :  { %2588 = vrot.lane.b32.xlu1 %v2587_v11, %s3770_s23 }
 0x3ce   :  { %616 = vadd.xlane.f32.xlu2 %v615_v0 }
 0x3d9   :  { %v572_v22 = vpop.xlane.xlu1 %571 }
 0x3da   :  { %v590_v23 = vsub.f32 %v558_v39, %v572_v22 }
 0x3dc   :  { %v600_v25 = vmul.f32 1.442695, %v590_v23 }
 0x3de   :  { %2655 = vpow2.f32 %v600_v25 }
 0x3e4   :  { %v3125_v27 = vpop.eup %2655 }
 0x3e5   :  { %v618_v28 = vsel %vm353_vm9, %v3125_v27, 0.0 }
 0x3e6   :  { %619 = vadd.xlane.f32.xlu2 %v618_v28 }
 0x3f1   :  { %v578_v24 = vpop.xlane.xlu0 %577 }
 0x3f2   :  { %v592_v29 = vsub.f32 %v560_v43, %v578_v24  ;;  %v2576_v24 = vunpack.i.h.bf16 %v3091_v41 }
 0x3f3   :  { %v575_v32 = vpop.xlane.xlu2 %574 }
 0x3f4   :  { %v604_v33 = vmul.f32 1.442695, %v592_v29  ;;  %v591_v34 = vsub.f32 %v559_v46, %v575_v32  ;;  %v2580_v29 = vunpack.i.l.bf16 %v3119_v12 }
 0x3f6   :  { %2657 = vpow2.f32 %v604_v33  ;;  %v602_v35 = vmul.f32 1.442695, %v591_v34 }
 0x3f8   :  { %2659 = vpow2.f32 %v602_v35 }
 0x3fc   :  { %v3129_v36 = vpop.eup %2657  ;;  %v584_v38 = vpop.xlane.xlu0 %583 }
 0x3fd   :  { %v624_v39 = vsel %vm353_vm9, %v3129_v36, 0.0  ;;  %v594_v54 = vsub.f32 %v3101_v50, %v584_v38 }
 0x3fe   :  { %v3134_v40 = vpop.eup %2659  ;;  %625 = vadd.xlane.f32.xlu1 %v624_v39  ;;  %938 = vrot.lane.b32.xlu2 %v2581_v37, %s3770_s23 }
 0x3ff   :  { %v621_v30 = vsel %vm353_vm9, %v3134_v40, 0.0  ;;  %v608_v2 = vmul.f32 1.442695, %v594_v54 }
 0x400   :  { %v587_v42 = vpop.xlane.xlu2 %586  ;;  %622 = vadd.xlane.f32.xlu0 %v621_v30 }
 0x401   :  { %v595_v43 = vsub.f32 %v563_v53, %v587_v42 }
 0x403   :  { %v610_v44 = vmul.f32 1.442695, %v595_v43 }
 0x404   :  { %v614_v45 = vpop.xlane.xlu0 %613 }
 0x405   :  { %2661 = vpow2.f32 %v610_v44  ;;  %v647_v3 = vand.u32 2147483648, %v614_v45  ;;  %vm641_vm12 = vweird.f32 %v614_v45 }
 0x406   :  { %2663 = vrcp.f32 %v614_v45 }
 0x407   :  { %v648_v50 = vor.u32 1.1754944e-38, %v647_v3 }
 0x408   :  { %v2584_v46 = vpop.permute.xlu2 %2583 }
 0x409   :  { %v2586_v47 = vunpack.i.h.bf16 %v2584_v46  ;;  %v2585_v26 = vunpack.i.l.bf16 %v2584_v46  ;;  %v581_v48 = vpop.xlane.xlu1 %580 }
 0x40a   :  { %v593_v49 = vsub.f32 %v561_v62, %v581_v48  ;;  %v645_v62 = vand.u32 2147483647, %v614_v45 }
 0x40b   :  { %v3139_v51 = vpop.eup %2661  ;;  %777 = vmatpush.msra.mxu3 %v2585_v26  ;;  %829 = vmatpush.msrb.mxu1 %v2586_v47 }
 0x40c   :  { %v2664_v52 = vpop.eup %2663  ;;  %v606_v31 = vmul.f32 1.442695, %v593_v49  ;;  %v633_v53 = vsel %vm353_vm9, %v3139_v51, 0.0  ;;  %vm646_vm14 = vcmp.eq.f32.partialorder %v645_v62, 8.507059e+37 }
 0x40d   :  { %v637_v56 = vmul.f32 %v2664_v52, %v614_v45  ;;  %634 = vadd.xlane.f32.xlu1 %v633_v53  ;;  %vm642_vm11 = vweird.f32 %v2664_v52 }
 0x40e   :  { %2665 = vpow2.f32 %v606_v31  ;;  %vm643_vm13 = vmor %vm641_vm12, %vm642_vm11 }
 0x40f   :  { %v638_v63 = vsub.f32 1.0, %v637_v56  ;;  %2667 = vpow2.f32 %v608_v2 }
 0x411   :  { %v639_v4 = vmul.f32 %v2664_v52, %v638_v63 }
 0x413   :  { %v640_v6 = vadd.f32 %v2664_v52, %v639_v4 }
 0x414   :  { %v3144_v9 = vpop.eup %2665 }
 0x415   :  { %v644_v11 = vsel %vm643_vm13, %v2664_v52, %v640_v6  ;;  %v627_v14 = vsel %vm353_vm9, %v3144_v9, 0.0  ;;  %v3150_v0 = vpop.eup %2667 }
 0x416   :  { %v649_v15 = vsel %vm646_vm14, %v648_v50, %v644_v11  ;;  %628 = vadd.xlane.f32.xlu0 %v627_v14  ;;  %v630_v22 = vsel %vm353_vm9, %v3150_v0, 0.0 }
 0x417   :  { %v650_v16 = vmul.f32 %v3108_v55, %v649_v15  ;;  %v2592_v55 = vpack.i.bf16 %v2580_v29, %v2992_v7 }
 0x419   :  { %2468 = vmatmul.msk.f32.vlgmr.msra.gmra.mxu3 %vm353_vm9, %v650_v16 }
 0x41e   :  { %631 = vadd.xlane.f32.xlu0 %v630_v22 }
 0x421   :  { %v2589_v23 = vpop.permute.xlu1 %2588 }
 0x422   :  { %v2591_v25 = vunpack.i.h.bf16 %v2589_v23  ;;  %v2590_v28 = vunpack.i.l.bf16 %v2589_v23 }
 0x424   :  { %855 = vmatpush.msrb.mxu2 %v2591_v25  ;;  %881 = vmatpush.msrb.mxu3 %v2590_v28 }
 0x426   :  { %886 = vrot.lane.b32.xlu1 %v2576_v24, %s3770_s23 }
 0x432   :  { %2593 = vrot.lane.b32.xlu0 %v2592_v55, %s3770_s23 }
 0x441   :  { %v3159_v32 = vpop.xlane.xlu2 %616 }
 0x459   :  { %v620_v33 = vpop.xlane.xlu2 %619 }
 0x45a   :  { %2669 = vrcp.f32 %v620_v33  ;;  %v677_v41 = vand.u32 2147483648, %v620_v33  ;;  %v675_v30 = vand.u32 2147483647, %v620_v33  ;;  %vm671_vm1 = vweird.f32 %v620_v33 }
 0x45c   :  { %v678_v12 = vor.u32 1.1754944e-38, %v677_v41  ;;  %vm676_vm3 = vcmp.eq.f32.partialorder %v675_v30, 8.507059e+37 }
 0x460   :  { %v2670_v34 = vpop.eup %2669 }
 0x461   :  { %v667_v35 = vmul.f32 %v2670_v34, %v620_v33  ;;  %v939_v37 = vpop.permute.xlu2 %938  ;;  %vm672_vm15 = vweird.f32 %v2670_v34 }
 0x462   :  { %959 = vmatpush.msra.mxu2 %v939_v37  ;;  %vm673_vm2 = vmor %vm671_vm1, %vm672_vm15 }
 0x463   :  { %v668_v38 = vsub.f32 1.0, %v667_v35 }
 0x465   :  { %v669_v39 = vmul.f32 %v2670_v34, %v668_v38 }
 0x467   :  { %v670_v42 = vadd.f32 %v2670_v34, %v669_v39 }
 0x469   :  { %v674_v7 = vsel %vm673_vm2, %v2670_v34, %v670_v42 }
 0x46a   :  { %v679_v43 = vsel %vm676_vm3, %v678_v12, %v674_v7 }
 0x46b   :  { %v680_v44 = vmul.f32 %v3125_v27, %v679_v43 }
 0x46d   :  { %2470 = vmatmul.msk.f32.vlgmr.msrb.gmra.mxu1 %vm353_vm9, %v680_v44 }
 0x471   :  { %v626_v45 = vpop.xlane.xlu1 %625 }
 0x472   :  { %2671 = vrcp.f32 %v626_v45  ;;  %v705_v54 = vand.u32 2147483647, %v626_v45  ;;  %v707_v31 = vand.u32 2147483648, %v626_v45  ;;  %vm701_vm5 = vweird.f32 %v626_v45 }
 0x473   :  { %v623_v46 = vpop.xlane.xlu0 %622 }
 0x474   :  { %2673 = vrcp.f32 %v623_v46  ;;  %v692_v63 = vand.u32 2147483648, %v623_v46  ;;  %v690_v3 = vand.u32 2147483647, %v623_v46  ;;  %vm706_vm11 = vcmp.eq.f32.partialorder %v705_v54, 8.507059e+37 }
 0x475   :  { %v708_v4 = vor.u32 1.1754944e-38, %v707_v31  ;;  %vm686_vm12 = vweird.f32 %v623_v46 }
 0x476   :  { %v693_v14 = vor.u32 1.1754944e-38, %v692_v63  ;;  %vm691_vm14 = vcmp.eq.f32.partialorder %v690_v3, 8.507059e+37 }
 0x478   :  { %v2672_v47 = vpop.eup %2671 }
 0x479   :  { %v697_v26 = vmul.f32 %v2672_v47, %v626_v45  ;;  %vm702_vm4 = vweird.f32 %v2672_v47 }
 0x47a   :  { %v2674_v48 = vpop.eup %2673  ;;  %vm703_vm7 = vmor %vm701_vm5, %vm702_vm4 }
 0x47b   :  { %v698_v49 = vsub.f32 1.0, %v697_v26  ;;  %v682_v52 = vmul.f32 %v2674_v48, %v623_v46  ;;  %vm687_vm6 = vweird.f32 %v2674_v48 }
 0x47c   :  { %vm688_vm13 = vmor %vm686_vm12, %vm687_vm6  ;;  %vm656_vm6 = vweird.f32 %v3159_v32 }
 0x47d   :  { %v699_v53 = vmul.f32 %v2672_v47, %v698_v49  ;;  %v683_v56 = vsub.f32 1.0, %v682_v52 }
 0x47f   :  { %v700_v2 = vadd.f32 %v2672_v47, %v699_v53  ;;  %v684_v27 = vmul.f32 %v2674_v48, %v683_v56 }
 0x480   :  { %v635_v62 = vpop.xlane.xlu1 %634 }
 0x481   :  { %v704_v6 = vsel %vm703_vm7, %v2672_v47, %v700_v2  ;;  %v685_v50 = vadd.f32 %v2674_v48, %v684_v27  ;;  %2675 = vrcp.f32 %v635_v62  ;;  %v752_v55 = vand.u32 2147483648, %v635_v62 }
 0x482   :  { %v709_v11 = vsel %vm706_vm11, %v708_v4, %v704_v6  ;;  %2677 = vrcp.f32 %v3159_v32  ;;  %v750_v34 = vand.u32 2147483647, %v635_v62  ;;  %vm746_vm1 = vweird.f32 %v635_v62 }
 0x483   :  { %v689_v15 = vsel %vm688_vm13, %v2674_v48, %v685_v50  ;;  %v710_v16 = vmul.f32 %v3129_v36, %v709_v11  ;;  %v753_v37 = vor.u32 1.1754944e-38, %v752_v55  ;;  %v662_v48 = vand.u32 2147483648, %v3159_v32 }
 0x484   :  { %v694_v22 = vsel %vm691_vm14, %v693_v14, %v689_v15  ;;  %vm751_vm3 = vcmp.eq.f32.partialorder %v750_v34, 8.507059e+37 }
 0x485   :  { %2472 = vmatmul.msk.f32.vlgmr.msrb.gmra.mxu3 %vm353_vm9, %v710_v16  ;;  %v695_v23 = vmul.f32 %v3134_v40, %v694_v22  ;;  %v663_v63 = vor.u32 1.1754944e-38, %v662_v48  ;;  %v2630_v48 = vld [vmem:[%s3754_s8] ss:$0 sm:$0xff] }
 0x487   :  { %v2676_v25 = vpop.eup %2675  ;;  %2471 = vmatmul.msk.f32.vlgmr.msrb.gmra.mxu2 %vm353_vm9, %v695_v23 }
 0x488   :  { %v742_v28 = vmul.f32 %v2676_v25, %v635_v62  ;;  %vm747_vm15 = vweird.f32 %v2676_v25  ;;  %v2678_v35 = vpop.eup %2677 }
 0x489   :  { %v3168_v24 = vpop.xlane.xlu0 %628  ;;  %vm748_vm2 = vmor %vm746_vm1, %vm747_vm15  ;;  %v652_v40 = vmul.f32 %v2678_v35, %v3159_v32  ;;  %vm657_vm4 = vweird.f32 %v2678_v35 }
 0x48a   :  { %v743_v29 = vsub.f32 1.0, %v742_v28  ;;  %2679 = vrcp.f32 %v3168_v24  ;;  %vm658_vm7 = vmor %vm656_vm6, %vm657_vm4  ;;  %v722_v50 = vand.u32 2147483648, %v3168_v24  ;;  %vm716_vm1 = vweird.f32 %v3168_v24 }
 0x48b   :  { %v653_v42 = vsub.f32 1.0, %v652_v40  ;;  %v720_v14 = vand.u32 2147483647, %v3168_v24  ;;  %v996_v40 = vld [vmem:[%s3753_s7 + $0x8] sm:$0xff]  ;;  %vm992_vm4 = vcmask 195584  }
 0x48c   :  { %v744_v33 = vmul.f32 %v2676_v25, %v743_v29 }
 0x48d   :  { %v654_v43 = vmul.f32 %v2678_v35, %v653_v42 }
 0x48e   :  { %v745_v36 = vadd.f32 %v2676_v25, %v744_v33 }
 0x48f   :  { %v655_v47 = vadd.f32 %v2678_v35, %v654_v43 }
 0x490   :  { %v749_v38 = vsel %vm748_vm2, %v2676_v25, %v745_v36  ;;  %v2680_v12 = vpop.eup %2679  ;;  %v723_v25 = vor.u32 1.1754944e-38, %v722_v50  ;;  %v998_v36 = vld [vmem:[%s3753_s7 + $0x18] sm:$0xff] }
 0x491   :  { %v754_v41 = vsel %vm751_vm3, %v753_v37, %v749_v38  ;;  %v632_v39 = vpop.xlane.xlu0 %631  ;;  %v712_v44 = vmul.f32 %v2680_v12, %v3168_v24  ;;  %v659_v56 = vsel %vm658_vm7, %v2678_v35, %v655_v47  ;;  %vm717_vm15 = vweird.f32 %v2680_v12  ;;  %v997_v37 = vld [vmem:[%s3753_s7 + $0x10] sm:$0xff]  ;;  %1021 = vmatpush.msra.mxu3 %v998_v36  ;;  %v995_v38 = vld [vmem:[%s3753_s7] sm:$0xff] }
 0x492   :  { %2681 = vrcp.f32 %v632_v39  ;;  %v755_v30 = vmul.f32 %v3139_v51, %v754_v41  ;;  %v737_v52 = vand.u32 2147483648, %v632_v39  ;;  %v660_v51 = vand.u32 2147483647, %v3159_v32  ;;  %vm718_vm2 = vmor %vm716_vm1, %vm717_vm15 }
 0x493   :  { %v713_v26 = vsub.f32 1.0, %v712_v44  ;;  %v735_v54 = vand.u32 2147483647, %v632_v39  ;;  %vm731_vm11 = vweird.f32 %v632_v39  ;;  %vm721_vm3 = vcmp.eq.f32.partialorder %v720_v14, 8.507059e+37  ;;  %1022 = vmatpush.msra.mxu3 %v997_v37 }
 0x494   :  { %2475 = vmatmul.msk.f32.vlgmr.msra.gmra.mxu2 %vm353_vm9, %v755_v30  ;;  %v738_v27 = vor.u32 1.1754944e-38, %v737_v52  ;;  %vm661_vm13 = vcmp.eq.f32.partialorder %v660_v51, 8.507059e+37  ;;  %v2747_v51 = vld [vmem:[%s3781_s29] sm:$0xff] }
 0x495   :  { %v714_v53 = vmul.f32 %v2680_v12, %v713_v26  ;;  %vm736_vm14 = vcmp.eq.f32.partialorder %v735_v54, 8.507059e+37  ;;  %v664_v4 = vsel %vm661_vm13, %v663_v63, %v659_v56  ;;  %1023 = vmatpush.msra.mxu3 %v996_v40  ;;  %v2748_v63 = vld [vmem:[%s3781_s29 + $0x8] sm:$0xff] }
 0x496   :  { %v665_v15 = vmul.f32 %v3121_v18, %v664_v4 }
 0x497   :  { %v715_v62 = vadd.f32 %v2680_v12, %v714_v53  ;;  %1024 = vmatpush.msra.mxu3 %v995_v38 }
 0x498   :  { %v2682_v7 = vpop.eup %2681  ;;  %v887_v23 = vpop.permute.xlu1 %886 }
 0x499   :  { %v727_v45 = vmul.f32 %v2682_v7, %v632_v39  ;;  %vm732_vm5 = vweird.f32 %v2682_v7  ;;  %v719_v22 = vsel %vm718_vm2, %v2680_v12, %v715_v62 }
 0x49a   :  { %vm733_vm12 = vmor %vm731_vm11, %vm732_vm5  ;;  %v724_v28 = vsel %vm721_vm3, %v723_v25, %v719_v22  ;;  %v1093_v22 = vld [vmem:[%s3757_s11 + $0x18] sm:$0xff]  ;;  %v1091_v25 = vld [vmem:[%s3757_s11 + $0x8] sm:$0xff] }
 0x49b   :  { %v728_v46 = vsub.f32 1.0, %v727_v45  ;;  %v725_v29 = vmul.f32 %v3144_v9, %v724_v28  ;;  %1116 = vmatpush.msrb.mxu3 %v1093_v22  ;;  %v1090_v28 = vld [vmem:[%s3757_s11] sm:$0xff] }
 0x49c   :  { %v1167_v22 = vld [vmem:[%s3759_s13] sm:$0xff] }
 0x49d   :  { %v729_v49 = vmul.f32 %v2682_v7, %v728_v46 }
 0x49f   :  { %v730_v31 = vadd.f32 %v2682_v7, %v729_v49 }
 0x4a1   :  { %v734_v2 = vsel %vm733_vm12, %v2682_v7, %v730_v31 }
 0x4a2   :  { %v739_v3 = vsel %vm736_vm14, %v738_v27, %v734_v2 }
 0x4a3   :  { %v740_v16 = vmul.f32 %v3150_v0, %v739_v3  ;;  %v779_v0 = vpop.f32.mrf.mxu3 }
 0x4a4   :  { %v2594_v6 = vpop.permute.xlu0 %2593 }
 0x4a5   :  { %v2596_v32 = vunpack.i.h.bf16 %v2594_v6  ;;  %v2595_v11 = vunpack.i.l.bf16 %v2594_v6 }
 0x4a7   :  { %803 = vmatpush.msrb.mxu0 %v2595_v11  ;;  %933 = vmatpush.msra.mxu1 %v2596_v32 }
 0x4a8   :  { %2469 = vmatmul.msk.f32.vlgmr.msrb.gmra.mxu0 %vm353_vm9, %v665_v15  ;;  %2474 = vmatmul.msk.f32.vlgmr.msra.gmra.mxu1 %vm353_vm9, %v740_v16 }
 0x4a9   :  { %907 = vmatpush.msra.mxu0 %v887_v23  ;;  %v1092_v23 = vld [vmem:[%s3757_s11 + $0x10] sm:$0xff] }
 0x4aa   :  { %1117 = vmatpush.msrb.mxu3 %v1092_v23 }
 0x4ac   :  { %1118 = vmatpush.msrb.mxu3 %v1091_v25 }
 0x4ae   :  { %1119 = vmatpush.msrb.mxu3 %v1090_v28 }
 0x4b0   :  { %2473 = vmatmul.msk.f32.vlgmr.msra.gmra.mxu0 %vm353_vm9, %v725_v29 }
 0x4ea   :  { %v831_v18 = vpop.f32.mrf.mxu1 }
 0x4eb   :  { %966 = vrot.lane.b32.xlu0 %v831_v18, %s3768_s24 }
 0x508   :  { %v883_v24 = vpop.f32.mrf.mxu3 }
 0x509   :  { %974 = vrot.lane.b32.xlu2 %v883_v24, %s2781_s1 }
 0x50a   :  { %v857_v55 = vpop.f32.mrf.mxu2 }
 0x50b   :  { %968 = vrot.lane.b32.xlu0 %v857_v55, %s3768_s24 }
 0x517   :  { %v961_v35 = vpop.f32.mrf.mxu2 }
 0x525   :  { %v805_v33 = vpop.f32.mrf.mxu0  ;;  %v935_v34 = vpop.f32.mrf.mxu1 }
 0x526   :  { %982 = vrot.lane.b32.xlu1 %v935_v34, %s3776_s26 }
 0x52d   :  { %v909_v9 = vpop.f32.mrf.mxu0 }
 0x52e   :  { %984 = vrot.lane.b32.xlu1 %v961_v35, %s3776_s26  ;;  %976 = vrot.lane.b32.xlu2 %v909_v9, %s2781_s1 }
 0x55d   :  { %v967_v41 = vpop.permute.xlu0 %966 }
 0x55e   :  { %v988_v30 = vsel %vm353_vm9, %v779_v0, %v967_v41 }
 0x563   :  { %v975_v39 = vpop.permute.xlu2 %974 }
 0x564   :  { %v990_v42 = vsel %vm224_vm8, %v988_v30, %v975_v39  ;;  %v2631_v39 = vld [vmem:[%s3755_s9] ss:$0 sm:$0xff] }
 0x57d   :  { %v969_v43 = vpop.permute.xlu0 %968 }
 0x57e   :  { %v989_v45 = vsel %vm353_vm9, %v805_v33, %v969_v43 }
 0x588   :  { %v977_v44 = vpop.permute.xlu2 %976 }
 0x589   :  { %v991_v46 = vsel %vm224_vm8, %v989_v45, %v977_v44 }
 0x598   :  { %v983_v12 = vpop.permute.xlu1 %982 }
 0x599   :  { %v993_v7 = vsel %vm992_vm4, %v990_v42, %v983_v12 }
 0x59a   :  { %2476 = vmatmul.msk.f32.vlgmr.msra.gmra.mxu3 %vm73_vm0, %v993_v7  ;;  %v2632_v7 = vld [vmem:[%s3756_s10] ss:$0 sm:$0xff] }
 0x5a0   :  { %v985_v47 = vpop.permute.xlu1 %984 }
 0x5a1   :  { %v994_v26 = vsel %vm992_vm4, %v991_v46, %v985_v47 }
 0x5a2   :  { %2477 = vmatmul.msk.f32.gmra.mxu3 %vm73_vm0, %v994_v26 }
 0x61d   :  { %v1026_v49 = vpop.f32.mrf.mxu3 }
 0x61e   :  { %v1027_v52 = vadd.f32 %v2630_v48, %v1026_v49 }
 0x620   :  { %v3219_v54 = vadd.f32 %v2747_v51, %v1027_v52  ;;  %v1182_v51 = vld [vmem:[%s3759_s13 + $0x78] sm:$0xff] }
 0x621   :  { %1187 = vmatpush.msrb.mxu1 %v1182_v51 }
 0x622   :  { %v1036_v31 = vsel %vm73_vm0, %v3219_v54, 0.0 }
 0x623   :  { %1037 = vadd.xlane.f32.xlu0 %v1036_v31  ;;  %v1181_v31 = vld [vmem:[%s3759_s13 + $0x70] sm:$0xff] }
 0x624   :  { %1188 = vmatpush.msrb.mxu1 %v1181_v31  ;;  %v2634_v31 = vld [vmem:[%s3760_s14] ss:$0 sm:$0xff] }
 0x625   :  { %v1029_v53 = vpop.f32.mrf.mxu3 }
 0x626   :  { %v1030_v56 = vadd.f32 %v2630_v48, %v1029_v53  ;;  %v1180_v53 = vld [vmem:[%s3759_s13 + $0x68] sm:$0xff] }
 0x627   :  { %1189 = vmatpush.msrb.mxu1 %v1180_v53 }
 0x628   :  { %v3226_v2 = vadd.f32 %v2748_v63, %v1030_v56  ;;  %v1179_v56 = vld [vmem:[%s3759_s13 + $0x60] sm:$0xff]  ;;  %v1178_v63 = vld [vmem:[%s3759_s13 + $0x58] sm:$0xff] }
 0x629   :  { %1190 = vmatpush.msrb.mxu1 %v1179_v56 }
 0x62a   :  { %v1039_v27 = vsel %vm73_vm0, %v3226_v2, 0.0 }
 0x62b   :  { %1040 = vadd.xlane.f32.xlu2 %v1039_v27  ;;  %1191 = vmatpush.msrb.mxu1 %v1178_v63  ;;  %v1177_v27 = vld [vmem:[%s3759_s13 + $0x50] sm:$0xff] }
 0x62d   :  { %1192 = vmatpush.msrb.mxu1 %v1177_v27 }
 0x696   :  { %v1038_v3 = vpop.xlane.xlu0 %1037 }
 0x697   :  { %v1042_v4 = vmul.f32 %v1038_v3, %v2895_v10  ;;  %v1176_v3 = vld [vmem:[%s3759_s13 + $0x48] sm:$0xff] }
 0x698   :  { %1193 = vmatpush.msrb.mxu1 %v1176_v3 }
 0x699   :  { %v1044_v62 = vsub.f32 %v3219_v54, %v1042_v4  ;;  %v1175_v4 = vld [vmem:[%s3759_s13 + $0x40] sm:$0xff] }
 0x69a   :  { %1194 = vmatpush.msrb.mxu1 %v1175_v4 }
 0x69b   :  { %v1046_v6 = vmul.f32 %v1044_v62, %v1044_v62 }
 0x69d   :  { %v1048_v50 = vsel %vm73_vm0, %v1046_v6, 0.0  ;;  %v1173_v6 = vld [vmem:[%s3759_s13 + $0x30] sm:$0xff] }
 0x69e   :  { %1049 = vadd.xlane.f32.xlu1 %v1048_v50  ;;  %v1041_v32 = vpop.xlane.xlu2 %1040  ;;  %v1172_v50 = vld [vmem:[%s3759_s13 + $0x28] sm:$0xff] }
 0x69f   :  { %v1043_v11 = vmul.f32 %v1041_v32, %v2895_v10  ;;  %v1171_v32 = vld [vmem:[%s3759_s13 + $0x20] sm:$0xff] }
 0x6a1   :  { %v1045_v14 = vsub.f32 %v3226_v2, %v1043_v11  ;;  %v1170_v11 = vld [vmem:[%s3759_s13 + $0x18] sm:$0xff] }
 0x6a3   :  { %v1047_v15 = vmul.f32 %v1045_v14, %v1045_v14 }
 0x6a5   :  { %v1051_v16 = vsel %vm73_vm0, %v1047_v15, 0.0  ;;  %v1169_v15 = vld [vmem:[%s3759_s13 + $0x10] sm:$0xff] }
 0x6a6   :  { %1052 = vadd.xlane.f32.xlu0 %v1051_v16  ;;  %v1168_v16 = vld [vmem:[%s3759_s13 + $0x8] sm:$0xff] }
 0x711   :  { %v1050_v29 = vpop.xlane.xlu1 %1049 }
 0x712   :  { %v1054_v18 = vmul.f32 %v1050_v29, %v2895_v10 }
 0x714   :  { %v1056_v0 = vadd.f32 1e-05, %v1054_v18 }
 0x716   :  { %2683 = vrsqrt.f32 %v1056_v0  ;;  %vm1064_vm6 = vweird.f32 %v1056_v0 }
 0x719   :  { %v1053_v24 = vpop.xlane.xlu0 %1052 }
 0x71a   :  { %v1055_v55 = vmul.f32 %v1053_v24, %v2895_v10 }
 0x71c   :  { %v2684_v33 = vpop.eup %2683  ;;  %v1057_v34 = vadd.f32 1e-05, %v1055_v55 }
 0x71d   :  { %v1059_v35 = vmul.f32 %v2684_v33, %v1056_v0  ;;  %vm1065_vm5 = vweird.f32 %v2684_v33 }
 0x71e   :  { %2685 = vrsqrt.f32 %v1057_v34  ;;  %vm1066_vm7 = vmor %vm1064_vm6, %vm1065_vm5  ;;  %vm1074_vm12 = vweird.f32 %v1057_v34 }
 0x71f   :  { %v1060_v9 = vmul.f32 %v2684_v33, %v1059_v35 }
 0x721   :  { %v1061_v36 = vmul.f32 0.5, %v1060_v9 }
 0x723   :  { %v1062_v37 = vsub.f32 1.5, %v1061_v36 }
 0x724   :  { %v2686_v40 = vpop.eup %2685 }
 0x725   :  { %v1063_v38 = vmul.f32 %v2684_v33, %v1062_v37  ;;  %v1069_v41 = vmul.f32 %v2686_v40, %v1057_v34  ;;  %vm1075_vm11 = vweird.f32 %v2686_v40 }
 0x726   :  { %vm1076_vm13 = vmor %vm1074_vm12, %vm1075_vm11 }
 0x727   :  { %v1067_v30 = vsel %vm1066_vm7, %v2684_v33, %v1063_v38  ;;  %v1070_v42 = vmul.f32 %v2686_v40, %v1069_v41 }
 0x728   :  { %v1078_v12 = vmul.f32 %v1067_v30, %v1044_v62  ;;  %v1174_v62 = vld [vmem:[%s3759_s13 + $0x38] sm:$0xff] }
 0x729   :  { %v1071_v43 = vmul.f32 0.5, %v1070_v42  ;;  %1195 = vmatpush.msrb.mxu1 %v1174_v62 }
 0x72a   :  { %v1083_v44 = vmul.f32 %v2631_v39, %v1078_v12 }
 0x72b   :  { %v1072_v45 = vsub.f32 1.5, %v1071_v43  ;;  %1196 = vmatpush.msrb.mxu1 %v1173_v6 }
 0x72c   :  { %v1088_v46 = vadd.f32 %v2632_v7, %v1083_v44 }
 0x72d   :  { %v1073_v47 = vmul.f32 %v2686_v40, %v1072_v45  ;;  %1197 = vmatpush.msrb.mxu1 %v1172_v50 }
 0x72e   :  { %2478 = vmatmul.msk.f32.vlgmr.msrb.gmra.mxu3 %vm73_vm0, %v1088_v46 }
 0x72f   :  { %v1077_v26 = vsel %vm1076_vm13, %v2686_v40, %v1073_v47  ;;  %1198 = vmatpush.msrb.mxu1 %v1171_v32 }
 0x730   :  { %v1079_v48 = vmul.f32 %v1077_v26, %v1045_v14  ;;  %v2633_v14 = vld [vmem:[%s3758_s12] ss:$0 sm:$0xff] }
 0x731   :  { %1199 = vmatpush.msrb.mxu1 %v1170_v11 }
 0x732   :  { %v1084_v49 = vmul.f32 %v2631_v39, %v1079_v48 }
 0x733   :  { %1200 = vmatpush.msrb.mxu1 %v1169_v15 }
 0x734   :  { %v1089_v52 = vadd.f32 %v2632_v7, %v1084_v49 }
 0x735   :  { %1201 = vmatpush.msrb.mxu1 %v1168_v16 }
 0x736   :  { %2479 = vmatmul.msk.f32.gmra.mxu3 %vm73_vm0, %v1089_v52 }
 0x737   :  { %1202 = vmatpush.msrb.mxu1 %v1167_v22 }
 0x7b1   :  { %v1121_v23 = vpop.f32.mrf.mxu3 }
 0x7b2   :  { %v1122_v25 = vadd.f32 %v2633_v14, %v1121_v23 }
 0x7b4   :  { %v2480_v28 = vmul.f32 -1.442695, %v1122_v25 }
 0x7b6   :  { %2687 = vpow2.f32 %v2480_v28  ;;  %v2486_v28 = vld [vmem:[%s3751_s5 + $0x30] sm:$0xff] }
 0x7b9   :  { %v1124_v29 = vpop.f32.mrf.mxu3 }
 0x7ba   :  { %v1125_v18 = vadd.f32 %v2633_v14, %v1124_v29  ;;  %v2485_v29 = vld [vmem:[%s3751_s5 + $0x28] sm:$0xff] }
 0x7bc   :  { %v2688_v0 = vpop.eup %2687  ;;  %v2481_v24 = vmul.f32 -1.442695, %v1125_v18 }
 0x7bd   :  { %v1133_v55 = vadd.f32 1.0, %v2688_v0 }
 0x7be   :  { %2689 = vpow2.f32 %v2481_v24 }
 0x7bf   :  { %2691 = vrcp.f32 %v1133_v55  ;;  %v1146_v37 = vand.u32 2147483648, %v1133_v55  ;;  %v1144_v38 = vand.u32 2147483647, %v1133_v55  ;;  %vm1140_vm15 = vweird.f32 %v1133_v55 }
 0x7c1   :  { %v1147_v30 = vor.u32 1.1754944e-38, %v1146_v37  ;;  %vm1145_vm2 = vcmp.eq.f32.partialorder %v1144_v38, 8.507059e+37 }
 0x7c4   :  { %v2690_v33 = vpop.eup %2689 }
 0x7c5   :  { %v2692_v34 = vpop.eup %2691  ;;  %v1134_v35 = vadd.f32 1.0, %v2690_v33 }
 0x7c6   :  { %v1136_v9 = vmul.f32 %v2692_v34, %v1133_v55  ;;  %vm1141_vm14 = vweird.f32 %v2692_v34 }
 0x7c7   :  { %2693 = vrcp.f32 %v1134_v35  ;;  %vm1142_vm1 = vmor %vm1140_vm15, %vm1141_vm14  ;;  %v1161_v45 = vand.u32 2147483648, %v1134_v35  ;;  %v1159_v47 = vand.u32 2147483647, %v1134_v35  ;;  %vm1155_vm5 = vweird.f32 %v1134_v35 }
 0x7c8   :  { %v1137_v36 = vsub.f32 1.0, %v1136_v9 }
 0x7c9   :  { %v1162_v48 = vor.u32 1.1754944e-38, %v1161_v45  ;;  %vm1160_vm7 = vcmp.eq.f32.partialorder %v1159_v47, 8.507059e+37 }
 0x7ca   :  { %v1138_v40 = vmul.f32 %v2692_v34, %v1137_v36 }
 0x7cc   :  { %v1139_v41 = vadd.f32 %v2692_v34, %v1138_v40 }
 0x7cd   :  { %v2694_v39 = vpop.eup %2693 }
 0x7ce   :  { %v1143_v42 = vsel %vm1142_vm1, %v2692_v34, %v1139_v41  ;;  %v1151_v12 = vmul.f32 %v2694_v39, %v1134_v35  ;;  %vm1156_vm3 = vweird.f32 %v2694_v39 }
 0x7cf   :  { %v1148_v7 = vsel %vm1145_vm2, %v1147_v30, %v1143_v42  ;;  %vm1157_vm6 = vmor %vm1155_vm5, %vm1156_vm3  ;;  %v2635_v42 = vld [vmem:[%s3749_s3 + $0x1] ss:$0 sm:$0xff] }
 0x7d0   :  { %v1165_v43 = vmul.f32 %v1148_v7, %v1122_v25  ;;  %v1152_v44 = vsub.f32 1.0, %v1151_v12  ;;  %v2487_v25 = vld [vmem:[%s3751_s5 + $0x38] sm:$0xff] }
 0x7d1   :  { %1298 = vmatpush.msrb.mxu2 %v2487_v25 }
 0x7d2   :  { %1203 = vmatmul.f32.vlgmr.msrb.gmra.mxu1 %v1165_v43  ;;  %v1153_v46 = vmul.f32 %v2694_v39, %v1152_v44  ;;  %v2636_v44 = vld [vmem:[%s3750_s4 + $0x1] ss:$0 sm:$0xff]  ;;  %s2438_s4 = sshll.u32 %s3764_s18, 4  ;;  %s2439_s4 = int_to_ptr.hbm [resolvable:$true] %s2438_s4 }
 0x7d3   :  { %1299 = vmatpush.msrb.mxu2 %v2486_v28 }
 0x7d4   :  { %v1154_v26 = vadd.f32 %v2694_v39, %v1153_v46 }
 0x7d5   :  { %1300 = vmatpush.msrb.mxu2 %v2485_v29  ;;  %v2750_v29 = vld [vmem:[%s3782_s25] sm:$0xff] }
 0x7d6   :  { %v1158_v49 = vsel %vm1157_vm6, %v2694_v39, %v1154_v26 }
 0x7d7   :  { %v1163_v52 = vsel %vm1160_vm7, %v1162_v48, %v1158_v49 }
 0x7d8   :  { %v1166_v51 = vmul.f32 %v1163_v52, %v1125_v18  ;;  %v2484_v18 = vld [vmem:[%s3751_s5 + $0x20] sm:$0xff]  ;;  %s3796_s5 = smov 24  }
 0x7d9   :  { %1301 = vmatpush.msrb.mxu2 %v2484_v18 }
 0x7da   :  { %1206 = vmatmul.f32.gmra.mxu1 %v1166_v51 }
 0x84f   :  { %v1204_v53 = vpop.f32.mrf.mxu1 }
 0x850   :  { %v1205_v56 = vadd.f32 %v2634_v31, %v1204_v53  ;;  %v2637_v53 = vld [vmem:[%s3752_s6 + $0x1] ss:$0 sm:$0xff]  ;;  %s2790_s6 = smov [#allocation2]  }
 0x851   :  { %s2436_s26 = sshll.u32 %s2790_s6, 4  ;;  %s2437_s26 = int_to_ptr.vmem [resolvable:$true] %s2436_s26 }
 0x852   :  { %v3313_v63 = vadd.f32 %v1205_v56, %v3219_v54 }
 0x854   :  { %v1216_v27 = vsel %vm73_vm0, %v3313_v63, 0.0 }
 0x855   :  { %1217 = vadd.xlane.f32.xlu2 %v1216_v27 }
 0x857   :  { %v1207_v3 = vpop.f32.mrf.mxu1 }
 0x858   :  { %v1208_v4 = vadd.f32 %v2634_v31, %v1207_v3 }
 0x85a   :  { %v3318_v62 = vadd.f32 %v1208_v4, %v3226_v2 }
 0x85c   :  { %v1219_v6 = vsel %vm73_vm0, %v3318_v62, 0.0 }
 0x85d   :  { %1220 = vadd.xlane.f32.xlu1 %v1219_v6 }
 0x8c8   :  { %v1218_v50 = vpop.xlane.xlu2 %1217 }
 0x8c9   :  { %v1222_v32 = vmul.f32 %v1218_v50, %v2895_v10 }
 0x8cb   :  { %v1224_v11 = vsub.f32 %v3313_v63, %v1222_v32 }
 0x8cd   :  { %v1226_v54 = vmul.f32 %v1224_v11, %v1224_v11 }
 0x8cf   :  { %v1228_v14 = vsel %vm73_vm0, %v1226_v54, 0.0 }
 0x8d0   :  { %v1221_v15 = vpop.xlane.xlu1 %1220  ;;  %1229 = vadd.xlane.f32.xlu0 %v1228_v14 }
 0x8d1   :  { %v1223_v16 = vmul.f32 %v1221_v15, %v2895_v10 }
 0x8d3   :  { %v1225_v22 = vsub.f32 %v3318_v62, %v1223_v16 }
 0x8d5   :  { %v1227_v2 = vmul.f32 %v1225_v22, %v1225_v22 }
 0x8d7   :  { %v1231_v23 = vsel %vm73_vm0, %v1227_v2, 0.0 }
 0x8d8   :  { %1232 = vadd.xlane.f32.xlu2 %v1231_v23 }
 0x943   :  { %v1230_v0 = vpop.xlane.xlu0 %1229 }
 0x944   :  { %v1234_v24 = vmul.f32 %v1230_v0, %v2895_v10 }
 0x946   :  { %v1236_v55 = vadd.f32 1e-05, %v1234_v24 }
 0x948   :  { %2695 = vrsqrt.f32 %v1236_v55  ;;  %vm1244_vm12 = vweird.f32 %v1236_v55 }
 0x94b   :  { %v1233_v33 = vpop.xlane.xlu2 %1232 }
 0x94c   :  { %v1235_v34 = vmul.f32 %v1233_v33, %v2895_v10 }
 0x94e   :  { %v2696_v35 = vpop.eup %2695  ;;  %v1237_v9 = vadd.f32 1e-05, %v1235_v34 }
 0x94f   :  { %v1239_v36 = vmul.f32 %v2696_v35, %v1236_v55  ;;  %vm1245_vm11 = vweird.f32 %v2696_v35 }
 0x950   :  { %2697 = vrsqrt.f32 %v1237_v9  ;;  %vm1246_vm13 = vmor %vm1244_vm12, %vm1245_vm11  ;;  %vm1254_vm15 = vweird.f32 %v1237_v9 }
 0x951   :  { %v1240_v37 = vmul.f32 %v2696_v35, %v1239_v36 }
 0x953   :  { %v1241_v40 = vmul.f32 0.5, %v1240_v37 }
 0x955   :  { %v1242_v38 = vsub.f32 1.5, %v1241_v40 }
 0x956   :  { %v2698_v41 = vpop.eup %2697 }
 0x957   :  { %v1243_v39 = vmul.f32 %v2696_v35, %v1242_v38  ;;  %v1249_v30 = vmul.f32 %v2698_v41, %v1237_v9  ;;  %vm1255_vm14 = vweird.f32 %v2698_v41 }
 0x958   :  { %vm1256_vm1 = vmor %vm1254_vm15, %vm1255_vm14 }
 0x959   :  { %v1247_v12 = vsel %vm1246_vm13, %v2696_v35, %v1243_v39  ;;  %v1250_v7 = vmul.f32 %v2698_v41, %v1249_v30 }
 0x95a   :  { %v1258_v43 = vmul.f32 %v1247_v12, %v1224_v11  ;;  %v2752_v12 = vld [vmem:[%s3783_s19] sm:$0xff] }
 0x95b   :  { %v1251_v45 = vmul.f32 0.5, %v1250_v7 }
 0x95c   :  { %v1263_v46 = vmul.f32 %v2635_v42, %v1258_v43 }
 0x95d   :  { %v1252_v47 = vsub.f32 1.5, %v1251_v45 }
 0x95e   :  { %v1268_v26 = vadd.f32 %v2636_v44, %v1263_v46 }
 0x95f   :  { %v1253_v48 = vmul.f32 %v2698_v41, %v1252_v47 }
 0x960   :  { %2489 = vmatmul.msk.f32.vlgmr.msrb.gmra.mxu2 %vm73_vm0, %v1268_v26 }
 0x961   :  { %v1257_v49 = vsel %vm1256_vm1, %v2698_v41, %v1253_v48 }
 0x962   :  { %v1259_v52 = vmul.f32 %v1257_v49, %v1225_v22 }
 0x964   :  { %v1264_v51 = vmul.f32 %v2635_v42, %v1259_v52 }
 0x966   :  { %v1269_v31 = vadd.f32 %v2636_v44, %v1264_v51 }
 0x968   :  { %2490 = vmatmul.msk.f32.gmra.mxu2 %vm73_vm0, %v1269_v31 }
 0x9e3   :  { %v1303_v56 = vpop.f32.mrf.mxu2 }
 0x9e4   :  { %v3353_v27 = vadd.f32 %v2637_v53, %v1303_v56 }
 0x9e6   :  { %v1363_v3 = vmul.f32 %v3353_v27, %v2966_v58  ;;  %v1349_v4 = vmul.f32 %v3353_v27, %v2964_v57  ;;  %v1325_v32 = vmul.f32 %v3353_v27, %v2979_v1  ;;  %v1311_v1 = vmul.f32 %v3353_v27, %v2989_v5 }
 0x9e7   :  { %v1347_v5 = vmul.f32 %v3353_v27, %v2972_v61  ;;  %v1323_v18 = vmul.f32 %v2750_v29, %v3353_v27  ;;  %v1309_v7 = vmul.f32 %v2752_v12, %v3353_v27 }
 0x9e8   :  { %1367 = vrot.lane.b32.xlu2 %v1363_v3, %s2783_s20  ;;  %1353 = vrot.lane.b32.xlu1 %v1349_v4, %s2783_s20 }
 0x9eb   :  { %v1306_v6 = vpop.f32.mrf.mxu2 }
 0x9ec   :  { %v3361_v50 = vadd.f32 %v2637_v53, %v1306_v6 }
 0x9ee   :  { %v1350_v11 = vmul.f32 %v3361_v50, %v2994_v8  ;;  %v1326_v54 = vmul.f32 %v3361_v50, %v2970_v60  ;;  %v1364_v57 = vmul.f32 %v3361_v50, %v2968_v59  ;;  %v1312_v58 = vmul.f32 %v3361_v50, %v3005_v13  ;;  %v2749_v59 = vld [vmem:[%s3782_s25 + $0x8] sm:$0xff] }
 0x9ef   :  { %v1361_v60 = vmul.f32 %v3353_v27, %v3016_v19  ;;  %v1324_v13 = vmul.f32 %v2749_v59, %v3361_v50  ;;  %v1348_v19 = vmul.f32 %v3361_v50, %v3018_v20  ;;  %v1362_v61 = vmul.f32 %v3361_v50, %v3020_v21  ;;  %v2751_v21 = vld [vmem:[%s3783_s19 + $0x8] sm:$0xff]  ;;  %s3788_s19 = smov 64  }
 0x9f0   :  { %1329 = vrot.lane.b32.xlu1 %v1325_v32, %s2783_s20  ;;  %1355 = vrot.lane.b32.xlu0 %v1350_v11, %s2783_s20  ;;  %v1310_v9 = vmul.f32 %v2751_v21, %v3361_v50  ;;  %v2597_v21 = vpack.i.bf16 %v3361_v50, %v3353_v27 }
 0x9f1   :  { %1331 = vrot.lane.b32.xlu2 %v1326_v54, %s2783_s20 }
 0x9f8   :  { %1369 = vrot.lane.b32.xlu0 %v1364_v57, %s2783_s20  ;;  %1317 = vrot.lane.b32.xlu1 %v1312_v58, %s2783_s20 }
 0xa00   :  { %1315 = vrot.lane.b32.xlu0 %v1311_v1, %s2783_s20 }
 0xa42   :  { %v1368_v8 = vpop.permute.xlu2 %1367 }
 0xa43   :  { %v1373_v14 = vsub.f32 %v1361_v60, %v1368_v8 }
 0xa45   :  { %1385 = vrot.lane.b32.xlu1 %v1373_v14, %s2783_s20 }
 0xa4b   :  { %v1332_v15 = vpop.permute.xlu2 %1331 }
 0xa4c   :  { %v1336_v16 = vsub.f32 %v1324_v13, %v1332_v15 }
 0xa4e   :  { %1341 = vrot.lane.b32.xlu1 %v1336_v16, %s2781_s1 }
 0xa5a   :  { %v1354_v22 = vpop.permute.xlu1 %1353 }
 0xa5b   :  { %v1359_v2 = vsub.f32 %v1347_v5, %v1354_v22 }
 0xa5d   :  { %1377 = vrot.lane.b32.xlu2 %v1359_v2, %s2784_s21 }
 0xa62   :  { %v1356_v23 = vpop.permute.xlu0 %1355  ;;  %v1330_v28 = vpop.permute.xlu1 %1329 }
 0xa63   :  { %v1360_v25 = vsub.f32 %v1348_v19, %v1356_v23  ;;  %v1335_v24 = vsub.f32 %v1323_v18, %v1330_v28 }
 0xa65   :  { %1379 = vrot.lane.b32.xlu0 %v1360_v25, %s2784_s21  ;;  %s3786_s21 = smov 120  }
 0xa6a   :  { %v1370_v0 = vpop.permute.xlu0 %1369  ;;  %v1318_v20 = vpop.permute.xlu1 %1317 }
 0xa6b   :  { %v1374_v55 = vsub.f32 %v1362_v61, %v1370_v0  ;;  %v1322_v36 = vsub.f32 %v1310_v9, %v1318_v20 }
 0xa6d   :  { %1339 = vrot.lane.b32.xlu0 %v1335_v24, %s2781_s1  ;;  %1387 = vrot.lane.b32.xlu2 %v1374_v55, %s2783_s20 }
 0xa72   :  { %v1316_v38 = vpop.permute.xlu0 %1315 }
 0xa73   :  { %v1321_v43 = vsub.f32 %v1309_v7, %v1316_v38 }
 0xab7   :  { %v1386_v33 = vpop.permute.xlu1 %1385  ;;  %v1378_v34 = vpop.permute.xlu2 %1377 }
 0xab8   :  { %v1391_v35 = vsel %vm224_vm8, %v1378_v34, %v1386_v33 }
 0xab9   :  { %1423 = vrot.lane.b32.xlu2 %v1391_v35, %s3786_s21  ;;  %2491 = vmatpush.xpose.msk.msra.mxu3 %vm353_vm9, %v1391_v35 }
 0xac0   :  { %v1342_v37 = vpop.permute.xlu1 %1341 }
 0xac1   :  { %v1346_v40 = vsel %vm224_vm8, %v1322_v36, %v1342_v37 }
 0xac2   :  { %1397 = vrot.lane.b32.xlu2 %v1346_v40, %s3786_s21  ;;  %v1414_v42 = vmul.f32 0.35355338, %v1346_v40 }
 0xac7   :  { %v1388_v41 = vpop.permute.xlu2 %1387 }
 0xaca   :  { %1431 = vrot.lane.b32.xlu2 %v1391_v35, %s3787_s2 }
 0xad2   :  { %1403 = vrot.lane.b32.xlu2 %v1346_v40, %s2783_s20 }
 0xad7   :  { %v1380_v39 = vpop.permute.xlu0 %1379 }
 0xad8   :  { %v1392_v30 = vsel %vm224_vm8, %v1380_v39, %v1388_v41 }
 0xad9   :  { %1425 = vrot.lane.b32.xlu0 %v1392_v30, %s3786_s21  ;;  %2493 = vmatpush.xpose.msk.msrb.mxu0 %vm353_vm9, %v1392_v30 }
 0xadc   :  { %2494 = vmatmul.msk.f32.vlgmr.msrb.gmra.mxu0 %vm353_vm9, %v1414_v42 }
 0xadf   :  { %v1340_v44 = vpop.permute.xlu0 %1339 }
 0xae0   :  { %v1345_v45 = vsel %vm224_vm8, %v1321_v43, %v1340_v44 }
 0xae1   :  { %v1413_v46 = vmul.f32 0.35355338, %v1345_v45  ;;  %1395 = vrot.lane.b32.xlu1 %v1345_v45, %s3786_s21  ;;  %1427 = vrot.lane.b32.xlu0 %v1391_v35, %s2783_s20 }
 0xae3   :  { %2492 = vmatmul.msk.f32.vlgmr.msra.gmra.mxu3 %vm353_vm9, %v1413_v46 }
 0xae9   :  { %1401 = vrot.lane.b32.xlu1 %v1345_v45, %s2783_s20  ;;  %1407 = vrot.lane.b32.xlu0 %v1345_v45, %s3787_s2 }
 0xaf1   :  { %1429 = vrot.lane.b32.xlu1 %v1392_v30, %s2783_s20  ;;  %1433 = vrot.lane.b32.xlu0 %v1392_v30, %s3787_s2 }
 0xaf9   :  { %1409 = vrot.lane.b32.xlu1 %v1346_v40, %s3787_s2 }
 0xb13   :  { %v1424_v47 = vpop.permute.xlu2 %1423 }
 0xb14   :  { %2495 = vmatpush.xpose.msk.msra.mxu2 %vm353_vm9, %v1424_v47 }
 0xb1c   :  { %v1398_v26 = vpop.permute.xlu2 %1397 }
 0xb1d   :  { %v1416_v52 = vmul.f32 0.35355338, %v1398_v26 }
 0xb24   :  { %v1432_v49 = vpop.permute.xlu2 %1431 }
 0xb2c   :  { %v1404_v57 = vpop.permute.xlu2 %1403 }
 0xb2d   :  { %v1418_v60 = vmul.f32 0.35355338, %v1404_v57 }
 0xb4b   :  { %v1426_v48 = vpop.permute.xlu0 %1425 }
 0xb4c   :  { %2497 = vmatpush.xpose.msk.msrb.mxu3 %vm353_vm9, %v1426_v48 }
 0xb4f   :  { %2498 = vmatmul.msk.f32.vlgmr.msrb.gmra.mxu3 %vm353_vm9, %v1416_v52 }
 0xb50   :  { %2503 = vmatpush.xpose.msk.msra.mxu3 %vm353_vm9, %v1432_v49 }
 0xb53   :  { %v1396_v51 = vpop.permute.xlu1 %1395  ;;  %v1428_v31 = vpop.permute.xlu0 %1427 }
 0xb54   :  { %v1415_v53 = vmul.f32 0.35355338, %v1396_v51  ;;  %2499 = vmatpush.xpose.msk.msra.mxu0 %vm353_vm9, %v1428_v31 }
 0xb56   :  { %2496 = vmatmul.msk.f32.vlgmr.msra.gmra.mxu2 %vm353_vm9, %v1415_v53 }
 0xb59   :  { %v1496_v56 = vpop.f32.mrf.mxu0 }
 0xb5a   :  { %v1650_v3 = vsel %vm3073_vm10, %v1496_v56, -1e+30 }
 0xb5b   :  { %v1402_v4 = vpop.permute.xlu1 %1401  ;;  %v1408_v6 = vpop.permute.xlu0 %1407  ;;  %v1660_v32 = vsel %vm353_vm9, %v1650_v3, -inf }
 0xb5c   :  { %v1417_v11 = vmul.f32 0.35355338, %v1402_v4  ;;  %v1419_v54 = vmul.f32 0.35355338, %v1408_v6  ;;  %1661 = vmax.xlane.f32.xlu1 %v1660_v32 }
 0xb5e   :  { %2500 = vmatmul.msk.f32.vlgmr.msra.gmra.mxu0 %vm353_vm9, %v1417_v11  ;;  %2504 = vmatmul.msk.f32.vlgmr.msra.gmra.mxu3 %vm353_vm9, %v1419_v54 }
 0xb63   :  { %v1430_v58 = vpop.permute.xlu1 %1429  ;;  %v1434_v1 = vpop.permute.xlu0 %1433 }
 0xb64   :  { %2501 = vmatpush.xpose.msk.msrb.mxu2 %vm353_vm9, %v1430_v58  ;;  %2505 = vmatpush.xpose.msk.msrb.mxu0 %vm353_vm9, %v1434_v1 }
 0xb66   :  { %v1471_v8 = vpop.f32.mrf.mxu3 }
 0xb67   :  { %v1649_v14 = vsel %vm3073_vm10, %v1471_v8, -1e+30  ;;  %2502 = vmatmul.msk.f32.vlgmr.msrb.gmra.mxu2 %vm353_vm9, %v1418_v60 }
 0xb68   :  { %v1657_v59 = vsel %vm353_vm9, %v1649_v14, -inf }
 0xb69   :  { %1658 = vmax.xlane.f32.xlu2 %v1657_v59 }
 0xb6b   :  { %v1410_v13 = vpop.permute.xlu1 %1409 }
 0xb6c   :  { %v1420_v15 = vmul.f32 0.35355338, %v1410_v13 }
 0xb6e   :  { %2506 = vmatmul.msk.f32.vlgmr.msrb.gmra.mxu0 %vm353_vm9, %v1420_v15 }
 0xbcf   :  { %v1662_v9 = vpop.xlane.xlu1 %1661 }
 0xbd0   :  { %v1682_v36 = vsub.f32 %v1650_v3, %v1662_v9 }
 0xbd2   :  { %v1546_v16 = vpop.f32.mrf.mxu3  ;;  %v1691_v37 = vmul.f32 1.442695, %v1682_v36 }
 0xbd3   :  { %v3466_v34 = vsel %vm3073_vm10, %v1546_v16, -1e+30 }
 0xbd4   :  { %v1666_v35 = vsel %vm353_vm9, %v3466_v34, -inf  ;;  %2699 = vpow2.f32 %v1691_v37 }
 0xbd9   :  { %v1521_v5 = vpop.f32.mrf.mxu2 }
 0xbda   :  { %v1651_v22 = vsel %vm3073_vm10, %v1521_v5, -1e+30  ;;  %v3475_v38 = vpop.eup %2699 }
 0xbdb   :  { %v1571_v2 = vpop.f32.mrf.mxu0  ;;  %v1663_v19 = vsel %vm353_vm9, %v1651_v22, -inf  ;;  %v1708_v39 = vsel %vm353_vm9, %v3475_v38, 0.0 }
 0xbdc   :  { %v1653_v23 = vsel %vm3073_vm10, %v1571_v2, -1e+30  ;;  %1664 = vmax.xlane.f32.xlu0 %v1663_v19  ;;  %v1659_v17 = vpop.xlane.xlu2 %1658 }
 0xbdd   :  { %v1669_v25 = vsel %vm353_vm9, %v1653_v23, -inf  ;;  %v1681_v40 = vsub.f32 %v1649_v14, %v1659_v17 }
 0xbde   :  { %1670 = vmax.xlane.f32.xlu2 %v1669_v25 }
 0xbdf   :  { %v1689_v41 = vmul.f32 1.442695, %v1681_v40 }
 0xbe1   :  { %v1621_v28 = vpop.f32.mrf.mxu3  ;;  %2701 = vpow2.f32 %v1689_v41 }
 0xbe2   :  { %v1655_v29 = vsel %vm3073_vm10, %v1621_v28, -1e+30 }
 0xbe3   :  { %v1675_v18 = vsel %vm353_vm9, %v1655_v29, -inf }
 0xbe4   :  { %1676 = vmax.xlane.f32.xlu1 %v1675_v18 }
 0xbe7   :  { %v3479_v30 = vpop.eup %2701 }
 0xbe8   :  { %v1705_v42 = vsel %vm353_vm9, %v3479_v30, 0.0 }
 0xbea   :  { %v1596_v61 = vpop.f32.mrf.mxu2 }
 0xbeb   :  { %v1654_v0 = vsel %vm3073_vm10, %v1596_v61, -1e+30  ;;  %v1646_v24 = vpop.f32.mrf.mxu0 }
 0xbec   :  { %v1656_v55 = vsel %vm3073_vm10, %v1646_v24, -1e+30  ;;  %v1672_v20 = vsel %vm353_vm9, %v1654_v0, -inf }
 0xbed   :  { %1673 = vmax.xlane.f32.xlu2 %v1672_v20  ;;  %v1678_v33 = vsel %vm353_vm9, %v1656_v55, -inf }
 0xbee   :  { %1679 = vmax.xlane.f32.xlu0 %v1678_v33 }
 0xbf6   :  { %1667 = vmax.xlane.f32.xlu0 %v1666_v35 }
 0xbfd   :  { %2598 = vrot.lane.b32.xlu1 %v2597_v21, %s3786_s21 }
 0xc05   :  { %2603 = vrot.lane.b32.xlu2 %v2597_v21, %s2783_s20  ;;  %s3795_s20 = smov 8  }
 0xc0a   :  { %2608 = vrot.lane.b32.xlu0 %v2597_v21, %s3787_s2 }
 0xc27   :  { %1709 = vadd.xlane.f32.xlu1 %v1708_v39 }
 0xc34   :  { %1706 = vadd.xlane.f32.xlu0 %v1705_v42 }
 0xc4f   :  { %v1665_v12 = vpop.xlane.xlu0 %1664 }
 0xc50   :  { %v1683_v44 = vsub.f32 %v1651_v22, %v1665_v12 }
 0xc51   :  { %v1671_v7 = vpop.xlane.xlu2 %1670 }
 0xc52   :  { %v1685_v43 = vsub.f32 %v1653_v23, %v1671_v7  ;;  %v1693_v46 = vmul.f32 1.442695, %v1683_v44 }
 0xc54   :  { %v1697_v45 = vmul.f32 1.442695, %v1685_v43 }
 0xc56   :  { %2703 = vpow2.f32 %v1697_v45 }
 0xc57   :  { %2705 = vpow2.f32 %v1693_v46  ;;  %v1677_v49 = vpop.xlane.xlu1 %1676 }
 0xc58   :  { %v1687_v3 = vsub.f32 %v1655_v29, %v1677_v49 }
 0xc5a   :  { %v1701_v32 = vmul.f32 1.442695, %v1687_v3 }
 0xc5c   :  { %v3483_v47 = vpop.eup %2703 }
 0xc5d   :  { %v1717_v26 = vsel %vm353_vm9, %v3483_v47, 0.0  ;;  %v3487_v31 = vpop.eup %2705 }
 0xc5e   :  { %1718 = vadd.xlane.f32.xlu2 %v1717_v26  ;;  %v1711_v6 = vsel %vm353_vm9, %v3487_v31, 0.0 }
 0xc60   :  { %v1674_v48 = vpop.xlane.xlu2 %1673 }
 0xc61   :  { %v1686_v52 = vsub.f32 %v1654_v0, %v1674_v48  ;;  %v1680_v51 = vpop.xlane.xlu0 %1679 }
 0xc62   :  { %v1688_v53 = vsub.f32 %v1656_v55, %v1680_v51 }
 0xc63   :  { %v1699_v56 = vmul.f32 1.442695, %v1686_v52 }
 0xc64   :  { %v1703_v4 = vmul.f32 1.442695, %v1688_v53 }
 0xc65   :  { %2707 = vpow2.f32 %v1699_v56 }
 0xc66   :  { %2709 = vpow2.f32 %v1703_v4  ;;  %1712 = vadd.xlane.f32.xlu2 %v1711_v6 }
 0xc67   :  { %2711 = vpow2.f32 %v1701_v32 }
 0xc68   :  { %v2604_v13 = vpop.permute.xlu2 %2603 }
 0xc69   :  { %v1668_v15 = vpop.xlane.xlu0 %1667  ;;  %v2605_v16 = vunpack.i.l.bf16 %v2604_v13  ;;  %v2606_v18 = vunpack.i.h.bf16 %v2604_v13 }
 0xc6a   :  { %v1684_v23 = vsub.f32 %v3466_v34, %v1668_v15 }
 0xc6b   :  { %v3491_v11 = vpop.eup %2707  ;;  %v2617_v5 = vpack.i.bf16 %v2605_v16, %v3361_v50 }
 0xc6c   :  { %v3493_v54 = vpop.eup %2709  ;;  %v1720_v57 = vsel %vm353_vm9, %v3491_v11, 0.0 }
 0xc6d   :  { %v1726_v58 = vsel %vm353_vm9, %v3493_v54, 0.0  ;;  %v3499_v8 = vpop.eup %2711 }
 0xc6e   :  { %1727 = vadd.xlane.f32.xlu1 %v1726_v58  ;;  %1721 = vadd.xlane.f32.xlu2 %v1720_v57  ;;  %v1723_v59 = vsel %vm353_vm9, %v3499_v8, 0.0 }
 0xc6f   :  { %v2599_v1 = vpop.permute.xlu1 %2598 }
 0xc70   :  { %v2600_v60 = vunpack.i.l.bf16 %v2599_v1  ;;  %v2601_v19 = vunpack.i.h.bf16 %v2599_v1 }
 0xc72   :  { %v2612_v14 = vpack.i.bf16 %v2600_v60, %v3353_v27  ;;  %v1695_v27 = vmul.f32 1.442695, %v1684_v23 }
 0xc74   :  { %2613 = vrot.lane.b32.xlu0 %v2612_v14, %s3788_s19  ;;  %2713 = vpow2.f32 %v1695_v27 }
 0xc76   :  { %1724 = vadd.xlane.f32.xlu1 %v1723_v59 }
 0xc7a   :  { %v3509_v28 = vpop.eup %2713 }
 0xc7b   :  { %v1714_v29 = vsel %vm353_vm9, %v3509_v28, 0.0 }
 0xc7c   :  { %v2609_v22 = vpop.permute.xlu0 %2608 }
 0xc7d   :  { %v2610_v2 = vunpack.i.l.bf16 %v2609_v22  ;;  %v2611_v50 = vunpack.i.h.bf16 %v2609_v22 }
 0xc7f   :  { %v2622_v25 = vpack.i.bf16 %v2610_v2, %v2601_v19 }
 0xc86   :  { %2618 = vrot.lane.b32.xlu2 %v2617_v5, %s3788_s19 }
 0xc8f   :  { %2623 = vrot.lane.b32.xlu1 %v2622_v25, %s3788_s19 }
 0xc9a   :  { %v1710_v0 = vpop.xlane.xlu1 %1709 }
 0xc9b   :  { %v1755_v7 = vand.u32 2147483648, %v1710_v0  ;;  %vm1749_vm6 = vweird.f32 %v1710_v0  ;;  %v1753_v56 = vand.u32 2147483647, %v1710_v0 }
 0xc9d   :  { %v1756_v3 = vor.u32 1.1754944e-38, %v1755_v7 }
 0xc9e   :  { %1715 = vadd.xlane.f32.xlu0 %v1714_v29 }
 0xca7   :  { %v1707_v61 = vpop.xlane.xlu0 %1706 }
 0xca8   :  { %2715 = vrcp.f32 %v1707_v61  ;;  %v1740_v42 = vand.u32 2147483648, %v1707_v61  ;;  %vm1734_vm2 = vweird.f32 %v1707_v61  ;;  %v1738_v43 = vand.u32 2147483647, %v1707_v61 }
 0xca9   :  { %2717 = vrcp.f32 %v1710_v0 }
 0xcaa   :  { %v1741_v51 = vor.u32 1.1754944e-38, %v1740_v42  ;;  %vm1739_vm7 = vcmp.eq.f32.partialorder %v1738_v43, 8.507059e+37 }
 0xcae   :  { %v2716_v24 = vpop.eup %2715 }
 0xcaf   :  { %v1730_v20 = vmul.f32 %v2716_v24, %v1707_v61  ;;  %v2718_v33 = vpop.eup %2717  ;;  %vm1735_vm10 = vweird.f32 %v2716_v24 }
 0xcb0   :  { %v1745_v34 = vmul.f32 %v2718_v33, %v1710_v0  ;;  %vm3522_vm3 = vmor %vm1734_vm2, %vm1735_vm10  ;;  %vm1750_vm5 = vweird.f32 %v2718_v33  ;;  %vm1754_vm10 = vcmp.eq.f32.partialorder %v1753_v56, 8.507059e+37 }
 0xcb1   :  { %v1731_v35 = vsub.f32 1.0, %v1730_v20  ;;  %vm3533_vm11 = vmor %vm1749_vm6, %vm1750_vm5 }
 0xcb2   :  { %1979 = vrot.lane.b32.xlu0 %v2606_v18, %s3788_s19  ;;  %v1746_v36 = vsub.f32 1.0, %v1745_v34 }
 0xcb3   :  { %v1732_v37 = vmul.f32 %v2716_v24, %v1731_v35 }
 0xcb4   :  { %v1747_v40 = vmul.f32 %v2718_v33, %v1746_v36 }
 0xcb5   :  { %v1733_v41 = vadd.f32 %v2716_v24, %v1732_v37 }
 0xcb6   :  { %v1748_v48 = vadd.f32 %v2718_v33, %v1747_v40 }
 0xcb7   :  { %v1737_v49 = vsel %vm3522_vm3, %v2716_v24, %v1733_v41 }
 0xcb8   :  { %v1742_v32 = vsel %vm1739_vm7, %v1741_v51, %v1737_v49  ;;  %v1752_v1 = vsel %vm3533_vm11, %v2718_v33, %v1748_v48 }
 0xcb9   :  { %v1743_v2 = vmul.f32 %v3479_v30, %v1742_v32  ;;  %v1757_v29 = vsel %vm1754_vm10, %v1756_v3, %v1752_v1 }
 0xcba   :  { %2031 = vrot.lane.b32.xlu0 %v2611_v50, %s3788_s19  ;;  %v1758_v20 = vmul.f32 %v3475_v38, %v1757_v29 }
 0xcd1   :  { %v3515_v55 = vpop.xlane.xlu2 %1718 }
 0xcd2   :  { %2719 = vrcp.f32 %v3515_v55  ;;  %v1800_v14 = vand.u32 2147483648, %v3515_v55  ;;  %vm1794_vm15 = vweird.f32 %v3515_v55  ;;  %v1798_v5 = vand.u32 2147483647, %v3515_v55 }
 0xcd4   :  { %v1801_v30 = vor.u32 1.1754944e-38, %v1800_v14  ;;  %vm1799_vm5 = vcmp.eq.f32.partialorder %v1798_v5, 8.507059e+37 }
 0xcd8   :  { %v3518_v21 = vpop.eup %2719 }
 0xcd9   :  { %v1713_v9 = vpop.xlane.xlu2 %1712  ;;  %v1790_v17 = vmul.f32 %v3518_v21, %v3515_v55  ;;  %vm1795_vm13 = vweird.f32 %v3518_v21 }
 0xcda   :  { %2721 = vrcp.f32 %v1713_v9  ;;  %v1770_v4 = vand.u32 2147483648, %v1713_v9  ;;  %v1768_v58 = vand.u32 2147483647, %v1713_v9  ;;  %vm1764_vm14 = vweird.f32 %v1713_v9  ;;  %vm3545_vm2 = vmor %vm1794_vm15, %vm1795_vm13 }
 0xcdb   :  { %v1791_v39 = vsub.f32 1.0, %v1790_v17 }
 0xcdc   :  { %v1771_v22 = vor.u32 1.1754944e-38, %v1770_v4  ;;  %vm1769_vm3 = vcmp.eq.f32.partialorder %v1768_v58, 8.507059e+37 }
 0xcdd   :  { %v1792_v52 = vmul.f32 %v3518_v21, %v1791_v39 }
 0xcdf   :  { %v1793_v60 = vadd.f32 %v3518_v21, %v1792_v52 }
 0xce0   :  { %v2722_v12 = vpop.eup %2721 }
 0xce1   :  { %v1760_v45 = vmul.f32 %v2722_v12, %v1713_v9  ;;  %v3526_v46 = vpop.xlane.xlu1 %1727  ;;  %v3528_v26 = vpop.xlane.xlu2 %1721  ;;  %vm1765_vm12 = vweird.f32 %v2722_v12  ;;  %v1797_v18 = vsel %vm3545_vm2, %v3518_v21, %v1793_v60 }
 0xce2   :  { %vm1766_vm1 = vmor %vm1764_vm14, %vm1765_vm12  ;;  %v1802_v55 = vsel %vm1799_vm5, %v1801_v30, %v1797_v18  ;;  %v1815_v56 = vand.u32 2147483648, %v3528_v26  ;;  %vm1809_vm14 = vweird.f32 %v3528_v26  ;;  %v1813_v4 = vand.u32 2147483647, %v3528_v26 }
 0xce3   :  { %v1761_v53 = vsub.f32 1.0, %v1760_v45  ;;  %v1803_v34 = vmul.f32 %v3483_v47, %v1802_v55  ;;  %v2518_v55 = vld [vmem:[%s3753_s7 + $0x38] sm:$0xff] }
 0xce4   :  { %v1816_v60 = vor.u32 1.1754944e-38, %v1815_v56  ;;  %vm1814_vm2 = vcmp.eq.f32.partialorder %v1813_v4, 8.507059e+37 }
 0xce5   :  { %v1762_v57 = vmul.f32 %v2722_v12, %v1761_v53 }
 0xce6   :  { %v2614_v59 = vpop.permute.xlu0 %2613 }
 0xce7   :  { %v1763_v13 = vadd.f32 %v2722_v12, %v1762_v57  ;;  %v2616_v15 = vunpack.i.h.bf16 %v2614_v59  ;;  %v2615_v16 = vunpack.i.l.bf16 %v2614_v59 }
 0xce9   :  { %v1767_v23 = vsel %vm1766_vm1, %v2722_v12, %v1763_v13  ;;  %v1725_v25 = vpop.xlane.xlu1 %1724  ;;  %1870 = vmatpush.msra.mxu2 %v2615_v16  ;;  %1922 = vmatpush.msra.mxu0 %v2616_v15  ;;  %v2619_v27 = vpop.permute.xlu2 %2618 }
 0xcea   :  { %v1772_v50 = vsel %vm1769_vm3, %v1771_v22, %v1767_v23  ;;  %2723 = vrcp.f32 %v1725_v25  ;;  %2507 = vmatmul.msk.f32.vlgmr.msra.gmra.mxu2 %vm353_vm9, %v1743_v2  ;;  %v2621_v61 = vunpack.i.h.bf16 %v2619_v27  ;;  %v2620_v0 = vunpack.i.l.bf16 %v2619_v27 }
 0xceb   :  { %v1773_v24 = vmul.f32 %v3487_v31, %v1772_v50  ;;  %v1830_v31 = vand.u32 2147483648, %v1725_v25  ;;  %vm1824_vm7 = vweird.f32 %v1725_v25  ;;  %v1828_v37 = vand.u32 2147483647, %v1725_v25 }
 0xcec   :  { %1896 = vmatpush.msrb.mxu3 %v2620_v0  ;;  %1974 = vmatpush.msrb.mxu2 %v2621_v61  ;;  %2725 = vrcp.f32 %v3528_v26  ;;  %v1843_v2 = vand.u32 2147483647, %v3526_v46 }
 0xced   :  { %2508 = vmatmul.msk.f32.vlgmr.msrb.gmra.mxu3 %vm353_vm9, %v1758_v20  ;;  %2509 = vmatmul.msk.f32.vlgmr.msra.gmra.mxu0 %vm353_vm9, %v1773_v24  ;;  %v1831_v17 = vor.u32 1.1754944e-38, %v1830_v31  ;;  %vm1829_vm12 = vcmp.eq.f32.partialorder %v1828_v37, 8.507059e+37  ;;  %2727 = vrcp.f32 %v3526_v46  ;;  %v2517_v20 = vld [vmem:[%s3753_s7 + $0x30] sm:$0xff] }
 0xcee   :  { %2115 = vmatpush.msra.mxu2 %v2518_v55 }
 0xcf0   :  { %v2724_v33 = vpop.eup %2723  ;;  %2116 = vmatpush.msra.mxu2 %v2517_v20 }
 0xcf1   :  { %v1820_v35 = vmul.f32 %v2724_v33, %v1725_v25  ;;  %vm1825_vm6 = vweird.f32 %v2724_v33 }
 0xcf2   :  { %2511 = vmatmul.msk.f32.vlgmr.msrb.gmra.mxu2 %vm353_vm9, %v1803_v34  ;;  %vm1826_vm11 = vmor %vm1824_vm7, %vm1825_vm6  ;;  %v2726_v12 = vpop.eup %2725  ;;  %vm1839_vm7 = vweird.f32 %v3526_v46  ;;  %v2515_v34 = vld [vmem:[%s3753_s7 + $0x20] sm:$0xff] }
 0xcf3   :  { %v1821_v21 = vsub.f32 1.0, %v1820_v35  ;;  %v1805_v7 = vmul.f32 %v2726_v12, %v3528_v26  ;;  %v2728_v45 = vpop.eup %2727  ;;  %vm1810_vm13 = vweird.f32 %v2726_v12  ;;  %v1845_v26 = vand.u32 2147483648, %v3526_v46 }
 0xcf4   :  { %v1835_v48 = vmul.f32 %v2728_v45, %v3526_v46  ;;  %vm1811_vm15 = vmor %vm1809_vm14, %vm1810_vm13  ;;  %vm1840_vm6 = vweird.f32 %v2728_v45 }
 0xcf5   :  { %v1822_v9 = vmul.f32 %v2724_v33, %v1821_v21  ;;  %v1806_v44 = vsub.f32 1.0, %v1805_v7  ;;  %v1846_v27 = vor.u32 1.1754944e-38, %v1845_v26 }
 0xcf6   :  { %v1836_v51 = vsub.f32 1.0, %v1835_v48 }
 0xcf7   :  { %v1823_v36 = vadd.f32 %v2724_v33, %v1822_v9  ;;  %v1807_v49 = vmul.f32 %v2726_v12, %v1806_v44 }
 0xcf8   :  { %v1837_v58 = vmul.f32 %v2728_v45, %v1836_v51 }
 0xcf9   :  { %v1827_v38 = vsel %vm1826_vm11, %v2724_v33, %v1823_v36  ;;  %v1808_v53 = vadd.f32 %v2726_v12, %v1807_v49  ;;  %vm1841_vm11 = vmor %vm1839_vm7, %vm1840_vm6  ;;  %v2516_v33 = vld [vmem:[%s3753_s7 + $0x28] sm:$0xff]  ;;  %s2791_s7 = smov 256  }
 0xcfa   :  { %v1832_v40 = vsel %vm1829_vm12, %v1831_v17, %v1827_v38  ;;  %v1838_v16 = vadd.f32 %v2728_v45, %v1837_v58  ;;  %vm1844_vm12 = vcmp.eq.f32.partialorder %v1843_v2, 8.507059e+37  ;;  %2117 = vmatpush.msra.mxu2 %v2516_v33  ;;  %v2526_v58 = vld [vmem:[%s3757_s11 + $0x30] sm:$0xff] }
 0xcfb   :  { %v1833_v47 = vmul.f32 %v3499_v8, %v1832_v40  ;;  %v1812_v1 = vsel %vm1811_vm15, %v2726_v12, %v1808_v53 }
 0xcfc   :  { %v1817_v13 = vsel %vm1814_vm2, %v1816_v60, %v1812_v1  ;;  %v1842_v25 = vsel %vm1841_vm11, %v2728_v45, %v1838_v16  ;;  %2118 = vmatpush.msra.mxu2 %v2515_v34  ;;  %v2525_v1 = vld [vmem:[%s3757_s11 + $0x28] sm:$0xff]  ;;  %v2524_v60 = vld [vmem:[%s3757_s11 + $0x20] sm:$0xff] }
 0xcfd   :  { %v1818_v23 = vmul.f32 %v3491_v11, %v1817_v13  ;;  %v1847_v29 = vsel %vm1844_vm12, %v1846_v27, %v1842_v25  ;;  %v2640_v27 = vld [vmem:[%s3756_s10 + $0x1] ss:$0 sm:$0xff] }
 0xd01   :  { %v2624_v41 = vpop.permute.xlu1 %2623 }
 0xd02   :  { %v2626_v39 = vunpack.i.h.bf16 %v2624_v41  ;;  %v2625_v42 = vunpack.i.l.bf16 %v2624_v41 }
 0xd04   :  { %1948 = vmatpush.msra.mxu1 %v2625_v42  ;;  %2026 = vmatpush.msrb.mxu0 %v2626_v39 }
 0xd05   :  { %2513 = vmatmul.msk.f32.vlgmr.msrb.gmra.mxu0 %vm353_vm9, %v1833_v47  ;;  %v2638_v47 = vld [vmem:[%s3754_s8 + $0x1] ss:$0 sm:$0xff] }
 0xd11   :  { %v1716_v43 = vpop.xlane.xlu0 %1715 }
 0xd12   :  { %2729 = vrcp.f32 %v1716_v43  ;;  %v1785_v6 = vand.u32 2147483648, %v1716_v43  ;;  %v1783_v57 = vand.u32 2147483647, %v1716_v43  ;;  %vm1779_vm10 = vweird.f32 %v1716_v43 }
 0xd14   :  { %v1786_v59 = vor.u32 1.1754944e-38, %v1785_v6  ;;  %vm1784_vm5 = vcmp.eq.f32.partialorder %v1783_v57, 8.507059e+37  ;;  %v2527_v57 = vld [vmem:[%s3757_s11 + $0x38] sm:$0xff] }
 0xd18   :  { %v2730_v52 = vpop.eup %2729 }
 0xd19   :  { %v1775_v8 = vmul.f32 %v2730_v52, %v1716_v43  ;;  %vm1780_vm1 = vweird.f32 %v2730_v52 }
 0xd1a   :  { %vm1781_vm3 = vmor %vm1779_vm10, %vm1780_vm1 }
 0xd1b   :  { %v1776_v3 = vsub.f32 1.0, %v1775_v8 }
 0xd1d   :  { %v1777_v32 = vmul.f32 %v2730_v52, %v1776_v3 }
 0xd1f   :  { %v1778_v14 = vadd.f32 %v2730_v52, %v1777_v32 }
 0xd21   :  { %v1782_v15 = vsel %vm1781_vm3, %v2730_v52, %v1778_v14 }
 0xd22   :  { %v1787_v5 = vsel %vm1784_vm5, %v1786_v59, %v1782_v15 }
 0xd23   :  { %v1788_v22 = vmul.f32 %v3509_v28, %v1787_v5  ;;  %v1848_v28 = vmul.f32 %v3493_v54, %v1847_v29 }
 0xd24   :  { %v1980_v19 = vpop.permute.xlu0 %1979 }
 0xd25   :  { %2510 = vmatmul.msk.f32.vlgmr.msra.gmra.mxu1 %vm353_vm9, %v1788_v22  ;;  %2000 = vmatpush.msra.mxu3 %v1980_v19  ;;  %v2639_v19 = vld [vmem:[%s3755_s9 + $0x1] ss:$0 sm:$0xff] }
 0xd26   :  { %2512 = vmatmul.msk.f32.vlgmr.msra.gmra.mxu3 %vm353_vm9, %v1818_v23 }
 0xd27   :  { %2214 = vmatpush.msrb.mxu3 %v2527_v57 }
 0xd29   :  { %2215 = vmatpush.msrb.mxu3 %v2526_v58 }
 0xd2b   :  { %2216 = vmatpush.msrb.mxu3 %v2525_v1 }
 0xd2c   :  { %v2032_v18 = vpop.permute.xlu0 %2031 }
 0xd2d   :  { %2052 = vmatpush.msrb.mxu1 %v2032_v18  ;;  %2217 = vmatpush.msrb.mxu3 %v2524_v60 }
 0xd2e   :  { %2514 = vmatmul.msk.f32.vlgmr.msrb.gmra.mxu1 %vm353_vm9, %v1848_v28 }
 0xd6a   :  { %v1924_v46 = vpop.f32.mrf.mxu0 }
 0xd6b   :  { %2059 = vrot.lane.b32.xlu2 %v1924_v46, %s3795_s20 }
 0xd6d   :  { %v1872_v11 = vpop.f32.mrf.mxu2 }
 0xd70   :  { %v1898_v61 = vpop.f32.mrf.mxu3 }
 0xd75   :  { %v1976_v50 = vpop.f32.mrf.mxu2 }
 0xd76   :  { %2067 = vrot.lane.b32.xlu1 %v1976_v50, %s2781_s1 }
 0xd82   :  { %v2028_v30 = vpop.f32.mrf.mxu0 }
 0xd83   :  { %2075 = vrot.lane.b32.xlu0 %v2028_v30, %s3796_s5 }
 0xda2   :  { %v1950_v0 = vpop.f32.mrf.mxu1 }
 0xda3   :  { %2061 = vrot.lane.b32.xlu2 %v1950_v0, %s3795_s20 }
 0xda9   :  { %v2002_v24 = vpop.f32.mrf.mxu3 }
 0xdaa   :  { %2069 = vrot.lane.b32.xlu1 %v2002_v24, %s2781_s1 }
 0xdab   :  { %v2054_v54 = vpop.f32.mrf.mxu1 }
 0xdac   :  { %2077 = vrot.lane.b32.xlu0 %v2054_v54, %s3796_s5 }
 0xdc5   :  { %v2060_v35 = vpop.permute.xlu2 %2059 }
 0xdc6   :  { %v2081_v9 = vsel %vm353_vm9, %v1872_v11, %v2060_v35  ;;  %v2548_v35 = vld [vmem:[%s3759_s13 + $0xf8] sm:$0xff] }
 0xdc7   :  { %2287 = vmatpush.msra.mxu0 %v2548_v35 }
 0xde8   :  { %v2068_v21 = vpop.permute.xlu1 %2067 }
 0xde9   :  { %v2083_v36 = vsel %vm224_vm8, %v2081_v9, %v2068_v21  ;;  %v2547_v21 = vld [vmem:[%s3759_s13 + $0xf0] sm:$0xff]  ;;  %v2546_v9 = vld [vmem:[%s3759_s13 + $0xe8] sm:$0xff] }
 0xdea   :  { %2288 = vmatpush.msra.mxu0 %v2547_v21 }
 0xdec   :  { %2289 = vmatpush.msra.mxu0 %v2546_v9 }
 0xdf5   :  { %v2076_v31 = vpop.permute.xlu0 %2075 }
 0xdf6   :  { %v2085_v37 = vsel %vm992_vm4, %v2083_v36, %v2076_v31  ;;  %v2545_v36 = vld [vmem:[%s3759_s13 + $0xe0] sm:$0xff]  ;;  %v2544_v31 = vld [vmem:[%s3759_s13 + $0xd8] sm:$0xff] }
 0xdf7   :  { %2520 = vmatmul.msk.f32.vlgmr.msra.gmra.mxu2 %vm73_vm0, %v2085_v37  ;;  %2290 = vmatpush.msra.mxu0 %v2545_v36  ;;  %v2543_v37 = vld [vmem:[%s3759_s13 + $0xd0] sm:$0xff] }
 0xdf9   :  { %2291 = vmatpush.msra.mxu0 %v2544_v31 }
 0xdfb   :  { %2292 = vmatpush.msra.mxu0 %v2543_v37 }
 0xdfd   :  { %v2062_v38 = vpop.permute.xlu2 %2061 }
 0xdfe   :  { %v2082_v17 = vsel %vm353_vm9, %v1898_v61, %v2062_v38  ;;  %v2542_v38 = vld [vmem:[%s3759_s13 + $0xc8] sm:$0xff] }
 0xdff   :  { %2293 = vmatpush.msra.mxu0 %v2542_v38  ;;  %v2375_v38 = vld [vmem:[%s3763_s17 + $0x38] sm:$0xff] }
 0xe00   :  { %2417 = vmatpush.msrb.mxu2 %v2375_v38 }
 0xe1c   :  { %v2070_v40 = vpop.permute.xlu1 %2069 }
 0xe1d   :  { %v2084_v41 = vsel %vm224_vm8, %v2082_v17, %v2070_v40  ;;  %v2541_v17 = vld [vmem:[%s3759_s13 + $0xc0] sm:$0xff]  ;;  %v2540_v40 = vld [vmem:[%s3759_s13 + $0xb8] sm:$0xff] }
 0xe1e   :  { %v2078_v39 = vpop.permute.xlu0 %2077  ;;  %2294 = vmatpush.msra.mxu0 %v2541_v17  ;;  %v2372_v17 = vld [vmem:[%s3763_s17 + $0x20] sm:$0xff] }
 0xe1f   :  { %v2086_v42 = vsel %vm992_vm4, %v2084_v41, %v2078_v39  ;;  %v2539_v41 = vld [vmem:[%s3759_s13 + $0xb0] sm:$0xff]  ;;  %v2538_v39 = vld [vmem:[%s3759_s13 + $0xa8] sm:$0xff] }
 0xe20   :  { %2521 = vmatmul.msk.f32.gmra.mxu2 %vm73_vm0, %v2086_v42  ;;  %2295 = vmatpush.msra.mxu0 %v2540_v40  ;;  %v2537_v42 = vld [vmem:[%s3759_s13 + $0xa0] sm:$0xff]  ;;  %v2373_v40 = vld [vmem:[%s3763_s17 + $0x28] sm:$0xff] }
 0xe21   :  { %2418 = vmatpush.msrb.mxu2 %v2373_v40 }
 0xe22   :  { %2296 = vmatpush.msra.mxu0 %v2539_v41  ;;  %v2370_v41 = vld [vmem:[%s3763_s17 + $0x10] sm:$0xff] }
 0xe24   :  { %2297 = vmatpush.msra.mxu0 %v2538_v39  ;;  %v2371_v39 = vld [vmem:[%s3763_s17 + $0x18] sm:$0xff] }
 0xe25   :  { %2419 = vmatpush.msrb.mxu2 %v2371_v39 }
 0xe26   :  { %2298 = vmatpush.msra.mxu0 %v2537_v42  ;;  %v2368_v42 = vld [vmem:[%s3763_s17] sm:$0xff] }
 0xe7a   :  { %v2120_v12 = vpop.f32.mrf.mxu2 }
 0xe7b   :  { %v2121_v7 = vadd.f32 %v2638_v47, %v2120_v12  ;;  %v2641_v12 = vld [vmem:[%s3758_s12 + $0x1] ss:$0 sm:$0xff] }
 0xe7d   :  { %v3607_v43 = vadd.f32 %v2121_v7, %v3313_v63  ;;  %v2535_v7 = vld [vmem:[%s3759_s13 + $0x90] sm:$0xff] }
 0xe7f   :  { %v2132_v44 = vsel %vm73_vm0, %v3607_v43, 0.0 }
 0xe80   :  { %2133 = vadd.xlane.f32.xlu2 %v2132_v44  ;;  %v2534_v44 = vld [vmem:[%s3759_s13 + $0x88] sm:$0xff] }
 0xea3   :  { %v2123_v45 = vpop.f32.mrf.mxu2 }
 0xea4   :  { %v2124_v48 = vadd.f32 %v2638_v47, %v2123_v45  ;;  %v2536_v47 = vld [vmem:[%s3759_s13 + $0x98] sm:$0xff]  ;;  %v2533_v45 = vld [vmem:[%s3759_s13 + $0x80] sm:$0xff] }
 0xea5   :  { %2299 = vmatpush.msra.mxu0 %v2536_v47  ;;  %v2369_v47 = vld [vmem:[%s3763_s17 + $0x8] sm:$0xff] }
 0xea6   :  { %v3612_v49 = vadd.f32 %v2124_v48, %v3318_v62  ;;  %2420 = vmatpush.msrb.mxu2 %v2369_v47 }
 0xea7   :  { %2300 = vmatpush.msra.mxu0 %v2535_v7 }
 0xea8   :  { %v2135_v52 = vsel %vm73_vm0, %v3612_v49, 0.0 }
 0xea9   :  { %2136 = vadd.xlane.f32.xlu1 %v2135_v52  ;;  %2301 = vmatpush.msra.mxu0 %v2534_v44 }
 0xeab   :  { %2302 = vmatpush.msra.mxu0 %v2533_v45 }
 0xef3   :  { %v2134_v8 = vpop.xlane.xlu2 %2133 }
 0xef4   :  { %v2138_v51 = vmul.f32 %v2134_v8, %v2895_v10 }
 0xef6   :  { %v2140_v53 = vsub.f32 %v3607_v43, %v2138_v51 }
 0xef8   :  { %v2142_v63 = vmul.f32 %v2140_v53, %v2140_v53 }
 0xefa   :  { %v2144_v56 = vsel %vm73_vm0, %v2142_v63, 0.0 }
 0xefb   :  { %2145 = vadd.xlane.f32.xlu0 %v2144_v56 }
 0xf1c   :  { %v2137_v3 = vpop.xlane.xlu1 %2136 }
 0xf1d   :  { %v2139_v4 = vmul.f32 %v2137_v3, %v2895_v10 }
 0xf1f   :  { %v2141_v6 = vsub.f32 %v3612_v49, %v2139_v4 }
 0xf21   :  { %v2143_v62 = vmul.f32 %v2141_v6, %v2141_v6 }
 0xf23   :  { %v2147_v32 = vsel %vm73_vm0, %v2143_v62, 0.0 }
 0xf24   :  { %2148 = vadd.xlane.f32.xlu2 %v2147_v32 }
 0xf6e   :  { %v2146_v14 = vpop.xlane.xlu0 %2145 }
 0xf6f   :  { %v2150_v59 = vmul.f32 %v2146_v14, %v2895_v10 }
 0xf71   :  { %v2152_v13 = vadd.f32 1e-05, %v2150_v59 }
 0xf73   :  { %2731 = vrsqrt.f32 %v2152_v13  ;;  %vm2160_vm9 = vweird.f32 %v2152_v13 }
 0xf79   :  { %v2732_v15 = vpop.eup %2731 }
 0xf7a   :  { %v2155_v16 = vmul.f32 %v2732_v15, %v2152_v13  ;;  %vm2161_vm8 = vweird.f32 %v2732_v15 }
 0xf7b   :  { %vm2162_vm4 = vmor %vm2160_vm9, %vm2161_vm8 }
 0xf7c   :  { %v2156_v5 = vmul.f32 %v2732_v15, %v2155_v16 }
 0xf7e   :  { %v2157_v26 = vmul.f32 0.5, %v2156_v5 }
 0xf80   :  { %v2158_v22 = vsub.f32 1.5, %v2157_v26 }
 0xf82   :  { %v2159_v2 = vmul.f32 %v2732_v15, %v2158_v22 }
 0xf84   :  { %v2163_v23 = vsel %vm2162_vm4, %v2732_v15, %v2159_v2 }
 0xf85   :  { %v2174_v25 = vmul.f32 %v2163_v23, %v2140_v53 }
 0xf87   :  { %v2179_v29 = vmul.f32 %v2639_v19, %v2174_v25 }
 0xf89   :  { %v2184_v18 = vadd.f32 %v2640_v27, %v2179_v29 }
 0xf8b   :  { %2529 = vmatmul.msk.f32.vlgmr.msrb.gmra.mxu3 %vm73_vm0, %v2184_v18 }
 0xf97   :  { %v2149_v28 = vpop.xlane.xlu2 %2148 }
 0xf98   :  { %v2151_v46 = vmul.f32 %v2149_v28, %v2895_v10 }
 0xf9a   :  { %v2153_v11 = vadd.f32 1e-05, %v2151_v46  ;;  %v2642_v46 = vld [vmem:[%s3760_s14 + $0x1] ss:$0 sm:$0xff] }
 0xf9c   :  { %2733 = vrsqrt.f32 %v2153_v11  ;;  %vm2170_vm14 = vweird.f32 %v2153_v11 }
 0xfa2   :  { %v2734_v50 = vpop.eup %2733 }
 0xfa3   :  { %v2165_v30 = vmul.f32 %v2734_v50, %v2153_v11  ;;  %vm2171_vm13 = vweird.f32 %v2734_v50 }
 0xfa4   :  { %vm2172_vm15 = vmor %vm2170_vm14, %vm2171_vm13 }
 0xfa5   :  { %v2166_v61 = vmul.f32 %v2734_v50, %v2165_v30 }
 0xfa7   :  { %v2167_v0 = vmul.f32 0.5, %v2166_v61 }
 0xfa9   :  { %v2168_v24 = vsub.f32 1.5, %v2167_v0 }
 0xfab   :  { %v2169_v54 = vmul.f32 %v2734_v50, %v2168_v24 }
 0xfad   :  { %v2173_v55 = vsel %vm2172_vm15, %v2734_v50, %v2169_v54 }
 0xfae   :  { %v2175_v20 = vmul.f32 %v2173_v55, %v2141_v6 }
 0xfb0   :  { %v2180_v33 = vmul.f32 %v2639_v19, %v2175_v20 }
 0xfb2   :  { %v2185_v34 = vadd.f32 %v2640_v27, %v2180_v33 }
 0xfb4   :  { %2530 = vmatmul.msk.f32.gmra.mxu3 %vm73_vm0, %v2185_v34 }
0x100e   :  { %v2219_v48 = vpop.f32.mrf.mxu3 }
0x100f   :  { %v2220_v52 = vadd.f32 %v2641_v12, %v2219_v48 }
0x1011   :  { %v2531_v8 = vmul.f32 -1.442695, %v2220_v52 }
0x1013   :  { %2735 = vpow2.f32 %v2531_v8 }
0x1019   :  { %v2736_v51 = vpop.eup %2735 }
0x101a   :  { %v2231_v53 = vadd.f32 1.0, %v2736_v51 }
0x101c   :  { %2737 = vrcp.f32 %v2231_v53  ;;  %v2244_v4 = vand.u32 2147483648, %v2231_v53  ;;  %v2242_v62 = vand.u32 2147483647, %v2231_v53  ;;  %vm2238_vm10 = vweird.f32 %v2231_v53 }
0x101e   :  { %v2245_v57 = vor.u32 1.1754944e-38, %v2244_v4  ;;  %vm2243_vm3 = vcmp.eq.f32.partialorder %v2242_v62, 8.507059e+37  ;;  %v2644_v4 = vld [vmem:[%s3762_s16] ss:$0 sm:$0xff] }
0x1022   :  { %v2738_v63 = vpop.eup %2737 }
0x1023   :  { %v2234_v56 = vmul.f32 %v2738_v63, %v2231_v53  ;;  %vm2239_vm1 = vweird.f32 %v2738_v63 }
0x1024   :  { %vm2240_vm2 = vmor %vm2238_vm10, %vm2239_vm1 }
0x1025   :  { %v2235_v3 = vsub.f32 1.0, %v2234_v56 }
0x1027   :  { %v2236_v6 = vmul.f32 %v2738_v63, %v2235_v3 }
0x1029   :  { %v2237_v32 = vadd.f32 %v2738_v63, %v2236_v6 }
0x102b   :  { %v2241_v58 = vsel %vm2240_vm2, %v2738_v63, %v2237_v32  ;;  %v2643_v63 = vld [vmem:[%s3761_s15] ss:$0 sm:$0xff] }
0x102c   :  { %v2246_v1 = vsel %vm2243_vm3, %v2245_v57, %v2241_v58 }
0x102d   :  { %v2263_v60 = vmul.f32 %v2246_v1, %v2220_v52 }
0x102f   :  { %2303 = vmatmul.f32.vlgmr.msra.gmra.mxu0 %v2263_v60 }
0x1037   :  { %v2222_v14 = vpop.f32.mrf.mxu3 }
0x1038   :  { %v2223_v59 = vadd.f32 %v2641_v12, %v2222_v14 }
0x103a   :  { %v2532_v13 = vmul.f32 -1.442695, %v2223_v59 }
0x103c   :  { %2739 = vpow2.f32 %v2532_v13 }
0x1042   :  { %v2740_v15 = vpop.eup %2739 }
0x1043   :  { %v2232_v16 = vadd.f32 1.0, %v2740_v15 }
0x1045   :  { %2741 = vrcp.f32 %v2232_v16  ;;  %v2259_v2 = vand.u32 2147483648, %v2232_v16  ;;  %v2257_v23 = vand.u32 2147483647, %v2232_v16  ;;  %vm2253_vm6 = vweird.f32 %v2232_v16 }
0x1047   :  { %v2260_v27 = vor.u32 1.1754944e-38, %v2259_v2  ;;  %vm2258_vm11 = vcmp.eq.f32.partialorder %v2257_v23, 8.507059e+37 }
0x104b   :  { %v2742_v5 = vpop.eup %2741 }
0x104c   :  { %v2249_v26 = vmul.f32 %v2742_v5, %v2232_v16  ;;  %vm2254_vm5 = vweird.f32 %v2742_v5 }
0x104d   :  { %vm2255_vm7 = vmor %vm2253_vm6, %vm2254_vm5 }
0x104e   :  { %v2250_v22 = vsub.f32 1.0, %v2249_v26 }
0x1050   :  { %v2251_v19 = vmul.f32 %v2742_v5, %v2250_v22 }
0x1052   :  { %v2252_v25 = vadd.f32 %v2742_v5, %v2251_v19 }
0x1054   :  { %v2256_v29 = vsel %vm2255_vm7, %v2742_v5, %v2252_v25 }
0x1055   :  { %v2261_v18 = vsel %vm2258_vm11, %v2260_v27, %v2256_v29 }
0x1056   :  { %v2264_v28 = vmul.f32 %v2261_v18, %v2223_v59 }
0x1058   :  { %2306 = vmatmul.f32.gmra.mxu0 %v2264_v28 }
0x10ac   :  { %v2304_v11 = vpop.f32.mrf.mxu0 }
0x10ad   :  { %v2305_v50 = vadd.f32 %v2642_v46, %v2304_v11 }
0x10af   :  { %v2310_v30 = vadd.f32 %v2305_v50, %v3607_v43 }
0x10b1   :  { %v2314_v61 = vsel %vm73_vm0, %v2310_v30, 0.0 }
0x10b2   :  { %2315 = vadd.xlane.f32.xlu1 %v2314_v61 }
0x10d5   :  { %v2307_v0 = vpop.f32.mrf.mxu0 }
0x10d6   :  { %v2308_v24 = vadd.f32 %v2642_v46, %v2307_v0 }
0x10d8   :  { %v2311_v54 = vadd.f32 %v2308_v24, %v3612_v49  ;;  %v2374_v49 = vld [vmem:[%s3763_s17 + $0x30] sm:$0xff] }
0x10d9   :  { %2394 = vmatpush.msra.mxu1 %v2374_v49 }
0x10da   :  { %v2317_v55 = vsel %vm73_vm0, %v2311_v54, 0.0 }
0x10db   :  { %2318 = vadd.xlane.f32.xlu0 %v2317_v55  ;;  %2395 = vmatpush.msra.mxu1 %v2372_v17 }
0x10dd   :  { %2396 = vmatpush.msra.mxu1 %v2370_v41 }
0x10df   :  { %2397 = vmatpush.msra.mxu1 %v2368_v42 }
0x1125   :  { %v2316_v20 = vpop.xlane.xlu1 %2315 }
0x1126   :  { %v2320_v33 = vmul.f32 %v2316_v20, %v2895_v10 }
0x1128   :  { %v2322_v34 = vsub.f32 %v2310_v30, %v2320_v33 }
0x112a   :  { %v2324_v35 = vmul.f32 %v2322_v34, %v2322_v34 }
0x112c   :  { %v2326_v21 = vsel %vm73_vm0, %v2324_v35, 0.0 }
0x112d   :  { %2327 = vadd.xlane.f32.xlu2 %v2326_v21 }
0x114e   :  { %v2319_v9 = vpop.xlane.xlu0 %2318 }
0x114f   :  { %v2321_v43 = vmul.f32 %v2319_v9, %v2895_v10 }
0x1151   :  { %v2323_v36 = vsub.f32 %v2311_v54, %v2321_v43 }
0x1153   :  { %v2325_v31 = vmul.f32 %v2323_v36, %v2323_v36 }
0x1155   :  { %v2329_v37 = vsel %vm73_vm0, %v2325_v31, 0.0 }
0x1156   :  { %2330 = vadd.xlane.f32.xlu1 %v2329_v37 }
0x11a0   :  { %v2328_v12 = vpop.xlane.xlu2 %2327 }
0x11a1   :  { %v2332_v7 = vmul.f32 %v2328_v12, %v2895_v10 }
0x11a3   :  { %v2334_v44 = vadd.f32 1e-05, %v2332_v7 }
0x11a5   :  { %2743 = vrsqrt.f32 %v2334_v44  ;;  %vm2342_vm8 = vweird.f32 %v2334_v44 }
0x11ab   :  { %v2744_v45 = vpop.eup %2743 }
0x11ac   :  { %v2337_v48 = vmul.f32 %v2744_v45, %v2334_v44  ;;  %vm2343_vm12 = vweird.f32 %v2744_v45 }
0x11ad   :  { %vm2344_vm9 = vmor %vm2342_vm8, %vm2343_vm12 }
0x11ae   :  { %v2338_v52 = vmul.f32 %v2744_v45, %v2337_v48 }
0x11b0   :  { %v2339_v8 = vmul.f32 0.5, %v2338_v52 }
0x11b2   :  { %v2340_v51 = vsub.f32 1.5, %v2339_v8 }
0x11b4   :  { %v2341_v53 = vmul.f32 %v2744_v45, %v2340_v51 }
0x11b6   :  { %v2345_v56 = vsel %vm2344_vm9, %v2744_v45, %v2341_v53 }
0x11b7   :  { %v2356_v3 = vmul.f32 %v2345_v56, %v2322_v34 }
0x11b9   :  { %v2361_v6 = vmul.f32 %v2643_v63, %v2356_v3 }
0x11bb   :  { %v2366_v62 = vadd.f32 %v2644_v4, %v2361_v6 }
0x11bd   :  { %2550 = vmatmul.msk.f32.vlgmr.msra.gmra.mxu1 %vm73_vm0, %v2366_v62  ;;  %2552 = vmatmul.msk.f32.vlgmr.msrb.gmra.mxu2 %vm73_vm0, %v2366_v62 }
0x11c9   :  { %v2331_v32 = vpop.xlane.xlu1 %2330 }
0x11ca   :  { %v2333_v57 = vmul.f32 %v2331_v32, %v2895_v10 }
0x11cc   :  { %v2335_v58 = vadd.f32 1e-05, %v2333_v57 }
0x11ce   :  { %2745 = vrsqrt.f32 %v2335_v58  ;;  %vm2352_vm13 = vweird.f32 %v2335_v58 }
0x11d4   :  { %v2746_v1 = vpop.eup %2745 }
0x11d5   :  { %v2347_v60 = vmul.f32 %v2746_v1, %v2335_v58  ;;  %vm2353_vm4 = vweird.f32 %v2746_v1 }
0x11d6   :  { %vm2354_vm14 = vmor %vm2352_vm13, %vm2353_vm4 }
0x11d7   :  { %v2348_v14 = vmul.f32 %v2746_v1, %v2347_v60 }
0x11d9   :  { %v2349_v59 = vmul.f32 0.5, %v2348_v14 }
0x11db   :  { %v2350_v13 = vsub.f32 1.5, %v2349_v59 }
0x11dd   :  { %v2351_v15 = vmul.f32 %v2746_v1, %v2350_v13 }
0x11df   :  { %v2355_v16 = vsel %vm2354_vm14, %v2746_v1, %v2351_v15 }
0x11e0   :  { %v2357_v5 = vmul.f32 %v2355_v16, %v2323_v36 }
0x11e2   :  { %v2362_v26 = vmul.f32 %v2643_v63, %v2357_v5 }
0x11e4   :  { %v2367_v22 = vadd.f32 %v2644_v4, %v2362_v26 }
0x11e6   :  { %2551 = vmatmul.msk.f32.gmra.mxu1 %vm73_vm0, %v2367_v22  ;;  %2553 = vmatmul.msk.f32.gmra.mxu2 %vm73_vm0, %v2367_v22 }
0x123a   :  { %v2399_v10 = vpop.f32.mrf.mxu1 }
0x123b   :  { %2428 = vst [vmem:[#allocation2] sm:$0xff] %v2399_v10 }
0x1240   :  { %v2422_v2 = vpop.f32.mrf.mxu2 }
0x1241   :  { %2429 = vst [vmem:[#allocation2 + $0x8] sm:$0xff] %v2422_v2 }
0x1263   :  { %v2402_v19 = vpop.f32.mrf.mxu1 }
0x1264   :  { %2430 = vst [vmem:[#allocation2 + $0x10] sm:$0xff] %v2402_v19 }
0x1269   :  { %v2425_v23 = vpop.f32.mrf.mxu2 }
0x126a   :  { %2431 = vst [vmem:[#allocation2 + $0x18] sm:$0xff] %v2425_v23 }
0x126b   :  { %2444 = dma.vmem_to_hbm [thread:$0]  %s2437_s26, 512, %s2439_s4, [#allocation3], %s2791_s7, %s2791_s7, %s2781_s1  }
0x126c   :  { %2777 = dma.done.wait [#allocation3], 512  }
0x126d   :  { %2778 = vsyncadd [#allocation3], 4294966784 }
0x126e   :  { %2449 = vsyncpa [#allocation3], 1 }

</bundles_post_ra>
